<compile_context>
chip_gen: v6e
topology: v6e:2x2x1
jax: 0.10.0
libtpu: 0.0.40
codegen_flags: <defaults>
</compile_context>

<pallas_src>
import jax
import jax.numpy as jnp
from jax.experimental import pallas as pl
from jax.experimental.pallas import tpu as pltpu

C_IN, C_OUT = 4, 8
N, H, W = 2, 16, 16
HW = H * W
TOT = N * HW
BN_EPS = 1e-5


def block_kernel(x_ref, dw_ref, pw_ref, bn_ref, out_ref):
    # ---- reflect-padding boundary masks, hoisted & computed once at (1, TOT) ----
    lane = jax.lax.broadcasted_iota(jnp.int32, (1, TOT), 1)
    w_id = lane & (W - 1)            # W = 16 (power of two)
    h_id = (lane >> 4) & (H - 1)     # H = 16
    w_first, w_last = w_id == 0, w_id == W - 1
    h_first, h_last = h_id == 0, h_id == H - 1

    def depthwise3x3(a, dw):
        # a: (C, TOT) flattened (n, h, w); dw: (C, >=9) taps, k = di*3 + dj.
        # pltpu.roll == jnp.roll semantics: out[:, p] = a[:, p - shift].
        # Wrapped lanes (image edges and cross-image) are never consumed:
        # boundary masks select the reflected neighbour instead.
        a_wm = pltpu.roll(a, 1, axis=1)          # value at w-1
        a_wp = pltpu.roll(a, TOT - 1, axis=1)    # value at w+1
        wv = (jnp.where(w_first, a_wp, a_wm),    # dj = 0 (w offset -1)
              a,                                 # dj = 1
              jnp.where(w_last, a_wm, a_wp))     # dj = 2 (w offset +1)
        acc = None
        for dj in range(3):
            v = wv[dj]
            v_hm = pltpu.roll(v, W, axis=1)        # value at h-1
            v_hp = pltpu.roll(v, TOT - W, axis=1)  # value at h+1
            hv = (jnp.where(h_first, v_hp, v_hm),  # di = 0 (h offset -1)
                  v,                               # di = 1
                  jnp.where(h_last, v_hm, v_hp))   # di = 2 (h offset +1)
            for di in range(3):
                k = di * 3 + dj
                term = dw[:, k:k + 1] * hv[di]
                acc = term if acc is None else acc + term
        return acc

    def batchnorm(y, g, b):
        # training-mode BatchNorm2d: per-channel batch stats over N*H*W,
        # biased variance, gamma folded into the per-channel scale.
        inv_n = 1.0 / TOT
        mean = jnp.sum(y, axis=1, keepdims=True) * inv_n
        ey2 = jnp.sum(y * y, axis=1, keepdims=True) * inv_n
        var = ey2 - mean * mean
        scale = jax.lax.rsqrt(var + BN_EPS) * g
        return y * scale + (b - mean * scale)

    # ---- packed parameter slabs ----
    dw_all = dw_ref[...]                 # (16, 16)
    dw1_ext = dw_all[0:8, :]             # rows 0:4 dw1, rows 4:8 identity (center tap 1)
    dw2 = dw_all[8:16, :]                # rows: dw2 (8 channels)
    pw_all = pw_ref[...]                 # (16, 16)
    lhs_fused = pw_all[:, 0:8]           # (16, 8) = [[pw1, 0], [0, wskip]]
    pw2 = pw_all[0:C_OUT, 8:16]          # (8, 8)
    bn = bn_ref[...]                     # (8, 8): columns g1,b1,g2,b2,gs,bs
    g1, b1 = bn[:, 0:1], bn[:, 1:2]
    g2, b2 = bn[:, 2:3], bn[:, 3:4]
    gs, bs = bn[:, 4:5], bn[:, 5:6]

    # ---- input slab (C_IN, TOT); inplace ReLU at rep[0] aliases x, so the
    #      skip branch also sees relu(x). 256-lane aligned concat = vreg placement.
    x4 = jnp.concatenate([x_ref[n] for n in range(N)], axis=1)   # (C_IN, TOT)
    xr = jnp.maximum(x4, 0.0)
    xr8 = jnp.concatenate([xr, xr], axis=0)                      # (8, TOT)

    # ---- rep: SepConv1 depthwise on rows 0:4; rows 4:8 pass xr through unchanged
    rhs = depthwise3x3(xr8, dw1_ext)                             # (8, TOT)
    # fused MXU call: rows 0:8 = pw1 @ dw_out, rows 8:16 = wskip @ xr
    fused = jnp.dot(lhs_fused, rhs, preferred_element_type=jnp.float32)  # (16, TOT)

    h = batchnorm(fused[0:C_OUT], g1, b1)            # rep BN1
    s = batchnorm(fused[C_OUT:2 * C_OUT], gs, bs)    # skip BN

    h = jnp.maximum(h, 0.0)
    h = depthwise3x3(h, dw2)
    h = jnp.dot(pw2, h, preferred_element_type=jnp.float32)
    h = batchnorm(h, g2, b2)

    res = h + s                                      # (C_OUT, TOT)
    for n in range(N):                               # two aligned (8, 256) stores
        out_ref[n] = res[:, n * HW:(n + 1) * HW]


def pack_params(p):
    """Pack the 11 small parameter tensors into 3 f32 slabs (off the hot path)."""
    dw_slab = jnp.zeros((16, 16), jnp.float32)
    dw_slab = dw_slab.at[0:C_IN, 0:9].set(p["dw1"].reshape(C_IN, 9).astype(jnp.float32))
    dw_slab = dw_slab.at[C_IN:8, 4].set(1.0)  # identity center taps (xr pass-through)
    dw_slab = dw_slab.at[8:8 + C_OUT, 0:9].set(p["dw2"].reshape(C_OUT, 9).astype(jnp.float32))

    pw_slab = jnp.zeros((16, 16), jnp.float32)
    pw_slab = pw_slab.at[0:C_OUT, 0:C_IN].set(p["pw1"].astype(jnp.float32))
    pw_slab = pw_slab.at[C_OUT:2 * C_OUT, C_IN:2 * C_IN].set(p["wskip"].astype(jnp.float32))
    pw_slab = pw_slab.at[0:C_OUT, 8:8 + C_OUT].set(p["pw2"].astype(jnp.float32))

    bn_slab = jnp.zeros((C_OUT, 8), jnp.float32)
    for j, name in enumerate(("g1", "b1", "g2", "b2", "gs", "bs")):
        bn_slab = bn_slab.at[:, j].set(p[name].astype(jnp.float32))
    return dw_slab, pw_slab, bn_slab


@jax.jit
def block_forward(x_nchw, dw_slab, pw_slab, bn_slab):
    # contiguous reshape only — no transpose around the pallas_call
    x_flat = x_nchw.reshape(N, C_IN, HW).astype(jnp.float32)
    vmem = pl.BlockSpec(memory_space=pltpu.MemorySpace.VMEM)
    out_flat = pl.pallas_call(
        block_kernel,
        out_shape=jax.ShapeDtypeStruct((N, C_OUT, HW), jnp.float32),
        in_specs=[vmem] * 4,
        out_specs=vmem,
    )(x_flat, dw_slab, pw_slab, bn_slab)
    return out_flat.reshape(N, C_OUT, H, W)


def block_reference(x, p):
    """Pure-JAX reference mirroring the PyTorch forward (for verification)."""
    def bn(y, g, b):
        m = jnp.mean(y, axis=(0, 2, 3), keepdims=True)
        v = jnp.mean((y - m) ** 2, axis=(0, 2, 3), keepdims=True)
        return (y - m) / jnp.sqrt(v + BN_EPS) * g[None, :, None, None] \
            + b[None, :, None, None]

    def sep(y, dw, pw):
        _, _, hh, ww = y.shape
        pad = jnp.pad(y, ((0, 0), (0, 0), (1, 1), (1, 1)), mode="reflect")
        z = jnp.zeros_like(y)
        for di in range(3):
            for dj in range(3):
                z = z + pad[:, :, di:di + hh, dj:dj + ww] * dw[None, :, di, dj, None, None]
        return jnp.einsum("oi,nihw->nohw", pw, z)

    xr = jnp.maximum(x, 0.0)          # inplace-ReLU aliasing
    h = bn(sep(xr, p["dw1"], p["pw1"]), p["g1"], p["b1"])
    h = jnp.maximum(h, 0.0)
    h = bn(sep(h, p["dw2"], p["pw2"]), p["g2"], p["b2"])
    skip = bn(jnp.einsum("oi,nihw->nohw", p["wskip"], xr), p["gs"], p["bs"])
    return h + skip


if __name__ == "__main__":
    keys = jax.random.split(jax.random.PRNGKey(0), 12)
    x = jax.random.normal(keys[0], (N, C_IN, H, W), jnp.float32)

    # Deterministic parameter init (shapes per the module __init__).  PyTorch
    # default BN init is gamma=1/beta=0; perturb slightly so the affine path is
    # actually exercised.
    params = {
        "dw1":   0.3 * jax.random.normal(keys[1], (C_IN, 3, 3), jnp.float32),
        "pw1":   0.3 * jax.random.normal(keys[2], (C_OUT, C_IN), jnp.float32),
        "g1":    1.0 + 0.1 * jax.random.normal(keys[3], (C_OUT,), jnp.float32),
        "b1":    0.1 * jax.random.normal(keys[4], (C_OUT,), jnp.float32),
        "dw2":   0.3 * jax.random.normal(keys[5], (C_OUT, 3, 3), jnp.float32),
        "pw2":   0.3 * jax.random.normal(keys[6], (C_OUT, C_OUT), jnp.float32),
        "g2":    1.0 + 0.1 * jax.random.normal(keys[7], (C_OUT,), jnp.float32),
        "b2":    0.1 * jax.random.normal(keys[8], (C_OUT,), jnp.float32),
        "wskip": 0.3 * jax.random.normal(keys[9], (C_OUT, C_IN), jnp.float32),
        "gs":    1.0 + 0.1 * jax.random.normal(keys[10], (C_OUT,), jnp.float32),
        "bs":    0.1 * jax.random.normal(keys[11], (C_OUT,), jnp.float32),
    }

    dw_slab, pw_slab, bn_slab = pack_params(params)   # packed once, off hot path

    out = block_forward(x, dw_slab, pw_slab, bn_slab)
    out = jax.block_until_ready(out)

    ref = jax.block_until_ready(block_reference(x, params))
    err = float(jnp.max(jnp.abs(out - ref)))
    assert out.shape == (N, C_OUT, H, W), out.shape
    assert err < 1e-4, f"max abs error {err}"
    print("KERNEL_OK")
</pallas_src>

<mosaic_0001>
module attributes {stable_mosaic.version = 11 : i64} {
  func.func @block_kernel(%arg0: memref<2x4x256xf32, #tpu.memory_space<vmem>>, %arg1: memref<16x16xf32, #tpu.memory_space<vmem>>, %arg2: memref<16x16xf32, #tpu.memory_space<vmem>>, %arg3: memref<8x8xf32, #tpu.memory_space<vmem>>, %arg4: memref<2x8x256xf32, #tpu.memory_space<vmem>>) attributes {dimension_semantics = [], scalar_prefetch = 0 : i64, scratch_operands = 0 : i64, tpu.core_type = #tpu.core_type<tc>} {
    %0 = tpu.iota {dimensions = array<i32: 1>} : vector<1x512xi32>
    %c15_i32 = arith.constant 15 : i32
    %1 = vector.broadcast %c15_i32 : i32 to vector<1x512xi32>
    %2 = arith.andi %0, %1 : vector<1x512xi32>
    %c4_i32 = arith.constant 4 : i32
    %3 = vector.broadcast %c4_i32 : i32 to vector<1x512xi32>
    %4 = arith.shrsi %0, %3 : vector<1x512xi32>
    %c15_i32_0 = arith.constant 15 : i32
    %5 = vector.broadcast %c15_i32_0 : i32 to vector<1x512xi32>
    %6 = arith.andi %4, %5 : vector<1x512xi32>
    %c0_i32 = arith.constant 0 : i32
    %7 = vector.broadcast %c0_i32 : i32 to vector<1x512xi32>
    %8 = arith.cmpi eq, %2, %7 : vector<1x512xi32>
    %c15_i32_1 = arith.constant 15 : i32
    %9 = vector.broadcast %c15_i32_1 : i32 to vector<1x512xi32>
    %10 = arith.cmpi eq, %2, %9 : vector<1x512xi32>
    %c0_i32_2 = arith.constant 0 : i32
    %11 = vector.broadcast %c0_i32_2 : i32 to vector<1x512xi32>
    %12 = arith.cmpi eq, %6, %11 : vector<1x512xi32>
    %c15_i32_3 = arith.constant 15 : i32
    %13 = vector.broadcast %c15_i32_3 : i32 to vector<1x512xi32>
    %14 = arith.cmpi eq, %6, %13 : vector<1x512xi32>
    %c0 = arith.constant 0 : index
    %c0_4 = arith.constant 0 : index
    %15 = vector.load %arg1[%c0, %c0_4] : memref<16x16xf32, #tpu.memory_space<vmem>>, vector<16x16xf32>
    %16 = vector.extract_strided_slice %15 {offsets = [0, 0], sizes = [8, 16], strides = [1, 1]} : vector<16x16xf32> to vector<8x16xf32>
    %17 = vector.extract_strided_slice %15 {offsets = [8, 0], sizes = [8, 16], strides = [1, 1]} : vector<16x16xf32> to vector<8x16xf32>
    %c0_5 = arith.constant 0 : index
    %c0_6 = arith.constant 0 : index
    %18 = vector.load %arg2[%c0_5, %c0_6] : memref<16x16xf32, #tpu.memory_space<vmem>>, vector<16x16xf32>
    %19 = vector.extract_strided_slice %18 {offsets = [0, 0], sizes = [16, 8], strides = [1, 1]} : vector<16x16xf32> to vector<16x8xf32>
    %20 = vector.extract_strided_slice %18 {offsets = [0, 8], sizes = [8, 8], strides = [1, 1]} : vector<16x16xf32> to vector<8x8xf32>
    %c0_7 = arith.constant 0 : index
    %c0_8 = arith.constant 0 : index
    %21 = vector.load %arg3[%c0_7, %c0_8] : memref<8x8xf32, #tpu.memory_space<vmem>>, vector<8x8xf32>
    %22 = vector.extract_strided_slice %21 {offsets = [0, 0], sizes = [8, 1], strides = [1, 1]} : vector<8x8xf32> to vector<8x1xf32>
    %23 = vector.extract_strided_slice %21 {offsets = [0, 1], sizes = [8, 1], strides = [1, 1]} : vector<8x8xf32> to vector<8x1xf32>
    %24 = vector.extract_strided_slice %21 {offsets = [0, 2], sizes = [8, 1], strides = [1, 1]} : vector<8x8xf32> to vector<8x1xf32>
    %25 = vector.extract_strided_slice %21 {offsets = [0, 3], sizes = [8, 1], strides = [1, 1]} : vector<8x8xf32> to vector<8x1xf32>
    %26 = vector.extract_strided_slice %21 {offsets = [0, 4], sizes = [8, 1], strides = [1, 1]} : vector<8x8xf32> to vector<8x1xf32>
    %27 = vector.extract_strided_slice %21 {offsets = [0, 5], sizes = [8, 1], strides = [1, 1]} : vector<8x8xf32> to vector<8x1xf32>
    %c0_9 = arith.constant 0 : index
    %c0_10 = arith.constant 0 : index
    %c0_11 = arith.constant 0 : index
    %28 = vector.load %arg0[%c0_9, %c0_10, %c0_11] : memref<2x4x256xf32, #tpu.memory_space<vmem>>, vector<1x4x256xf32>
    %29 = vector.shape_cast %28 : vector<1x4x256xf32> to vector<4x256xf32>
    %c1 = arith.constant 1 : index
    %c0_12 = arith.constant 0 : index
    %c0_13 = arith.constant 0 : index
    %30 = vector.load %arg0[%c1, %c0_12, %c0_13] : memref<2x4x256xf32, #tpu.memory_space<vmem>>, vector<1x4x256xf32>
    %31 = vector.shape_cast %30 : vector<1x4x256xf32> to vector<4x256xf32>
    %32 = tpu.concatenate %29, %31 in 1 : vector<4x256xf32>, vector<4x256xf32> -> vector<4x512xf32>
    %cst = arith.constant 0.000000e+00 : f32
    %33 = vector.broadcast %cst : f32 to vector<4x512xf32>
    %34 = arith.maximumf %32, %33 : vector<4x512xf32>
    %35 = tpu.concatenate %34, %34 in 0 : vector<4x512xf32>, vector<4x512xf32> -> vector<8x512xf32>
    %c1_i32 = arith.constant 1 : i32
    %36 = tpu.dynamic_rotate %35 by %c1_i32 dim 1 : vector<8x512xf32>, i32 -> vector<8x512xf32>
    %c511_i32 = arith.constant 511 : i32
    %37 = tpu.dynamic_rotate %35 by %c511_i32 dim 1 : vector<8x512xf32>, i32 -> vector<8x512xf32>
    %38 = vector.shape_cast %8 : vector<1x512xi1> to vector<1x512xi1>
    %39 = vector.broadcast %38 : vector<1x512xi1> to vector<8x512xi1>
    %40 = arith.select %39, %37, %36 : vector<8x512xi1>, vector<8x512xf32>
    %41 = vector.shape_cast %10 : vector<1x512xi1> to vector<1x512xi1>
    %42 = vector.broadcast %41 : vector<1x512xi1> to vector<8x512xi1>
    %43 = arith.select %42, %36, %37 : vector<8x512xi1>, vector<8x512xf32>
    %c16_i32 = arith.constant 16 : i32
    %44 = tpu.dynamic_rotate %40 by %c16_i32 dim 1 : vector<8x512xf32>, i32 -> vector<8x512xf32>
    %c496_i32 = arith.constant 496 : i32
    %45 = tpu.dynamic_rotate %40 by %c496_i32 dim 1 : vector<8x512xf32>, i32 -> vector<8x512xf32>
    %46 = vector.shape_cast %12 : vector<1x512xi1> to vector<1x512xi1>
    %47 = vector.broadcast %46 : vector<1x512xi1> to vector<8x512xi1>
    %48 = arith.select %47, %45, %44 : vector<8x512xi1>, vector<8x512xf32>
    %49 = vector.shape_cast %14 : vector<1x512xi1> to vector<1x512xi1>
    %50 = vector.broadcast %49 : vector<1x512xi1> to vector<8x512xi1>
    %51 = arith.select %50, %44, %45 : vector<8x512xi1>, vector<8x512xf32>
    %52 = vector.extract_strided_slice %16 {offsets = [0, 0], sizes = [8, 1], strides = [1, 1]} : vector<8x16xf32> to vector<8x1xf32>
    %53 = vector.broadcast %52 : vector<8x1xf32> to vector<8x512xf32>
    %54 = arith.mulf %53, %48 : vector<8x512xf32>
    %55 = vector.extract_strided_slice %16 {offsets = [0, 3], sizes = [8, 1], strides = [1, 1]} : vector<8x16xf32> to vector<8x1xf32>
    %56 = vector.broadcast %55 : vector<8x1xf32> to vector<8x512xf32>
    %57 = arith.mulf %56, %40 : vector<8x512xf32>
    %58 = arith.addf %54, %57 : vector<8x512xf32>
    %59 = vector.extract_strided_slice %16 {offsets = [0, 6], sizes = [8, 1], strides = [1, 1]} : vector<8x16xf32> to vector<8x1xf32>
    %60 = vector.broadcast %59 : vector<8x1xf32> to vector<8x512xf32>
    %61 = arith.mulf %60, %51 : vector<8x512xf32>
    %62 = arith.addf %58, %61 : vector<8x512xf32>
    %c16_i32_14 = arith.constant 16 : i32
    %63 = tpu.dynamic_rotate %35 by %c16_i32_14 dim 1 : vector<8x512xf32>, i32 -> vector<8x512xf32>
    %c496_i32_15 = arith.constant 496 : i32
    %64 = tpu.dynamic_rotate %35 by %c496_i32_15 dim 1 : vector<8x512xf32>, i32 -> vector<8x512xf32>
    %65 = vector.shape_cast %12 : vector<1x512xi1> to vector<1x512xi1>
    %66 = vector.broadcast %65 : vector<1x512xi1> to vector<8x512xi1>
    %67 = arith.select %66, %64, %63 : vector<8x512xi1>, vector<8x512xf32>
    %68 = vector.shape_cast %14 : vector<1x512xi1> to vector<1x512xi1>
    %69 = vector.broadcast %68 : vector<1x512xi1> to vector<8x512xi1>
    %70 = arith.select %69, %63, %64 : vector<8x512xi1>, vector<8x512xf32>
    %71 = vector.extract_strided_slice %16 {offsets = [0, 1], sizes = [8, 1], strides = [1, 1]} : vector<8x16xf32> to vector<8x1xf32>
    %72 = vector.broadcast %71 : vector<8x1xf32> to vector<8x512xf32>
    %73 = arith.mulf %72, %67 : vector<8x512xf32>
    %74 = arith.addf %62, %73 : vector<8x512xf32>
    %75 = vector.extract_strided_slice %16 {offsets = [0, 4], sizes = [8, 1], strides = [1, 1]} : vector<8x16xf32> to vector<8x1xf32>
    %76 = vector.broadcast %75 : vector<8x1xf32> to vector<8x512xf32>
    %77 = arith.mulf %76, %35 : vector<8x512xf32>
    %78 = arith.addf %74, %77 : vector<8x512xf32>
    %79 = vector.extract_strided_slice %16 {offsets = [0, 7], sizes = [8, 1], strides = [1, 1]} : vector<8x16xf32> to vector<8x1xf32>
    %80 = vector.broadcast %79 : vector<8x1xf32> to vector<8x512xf32>
    %81 = arith.mulf %80, %70 : vector<8x512xf32>
    %82 = arith.addf %78, %81 : vector<8x512xf32>
    %c16_i32_16 = arith.constant 16 : i32
    %83 = tpu.dynamic_rotate %43 by %c16_i32_16 dim 1 : vector<8x512xf32>, i32 -> vector<8x512xf32>
    %c496_i32_17 = arith.constant 496 : i32
    %84 = tpu.dynamic_rotate %43 by %c496_i32_17 dim 1 : vector<8x512xf32>, i32 -> vector<8x512xf32>
    %85 = vector.shape_cast %12 : vector<1x512xi1> to vector<1x512xi1>
    %86 = vector.broadcast %85 : vector<1x512xi1> to vector<8x512xi1>
    %87 = arith.select %86, %84, %83 : vector<8x512xi1>, vector<8x512xf32>
    %88 = vector.shape_cast %14 : vector<1x512xi1> to vector<1x512xi1>
    %89 = vector.broadcast %88 : vector<1x512xi1> to vector<8x512xi1>
    %90 = arith.select %89, %83, %84 : vector<8x512xi1>, vector<8x512xf32>
    %91 = vector.extract_strided_slice %16 {offsets = [0, 2], sizes = [8, 1], strides = [1, 1]} : vector<8x16xf32> to vector<8x1xf32>
    %92 = vector.broadcast %91 : vector<8x1xf32> to vector<8x512xf32>
    %93 = arith.mulf %92, %87 : vector<8x512xf32>
    %94 = arith.addf %82, %93 : vector<8x512xf32>
    %95 = vector.extract_strided_slice %16 {offsets = [0, 5], sizes = [8, 1], strides = [1, 1]} : vector<8x16xf32> to vector<8x1xf32>
    %96 = vector.broadcast %95 : vector<8x1xf32> to vector<8x512xf32>
    %97 = arith.mulf %96, %43 : vector<8x512xf32>
    %98 = arith.addf %94, %97 : vector<8x512xf32>
    %99 = vector.extract_strided_slice %16 {offsets = [0, 8], sizes = [8, 1], strides = [1, 1]} : vector<8x16xf32> to vector<8x1xf32>
    %100 = vector.broadcast %99 : vector<8x1xf32> to vector<8x512xf32>
    %101 = arith.mulf %100, %90 : vector<8x512xf32>
    %102 = arith.addf %98, %101 : vector<8x512xf32>
    %cst_18 = arith.constant dense<0.000000e+00> : vector<16x512xf32>
    %103 = tpu.matmul %19, %102, %cst_18 {dimension_numbers = #tpu.dot_dimension_numbers<[1], [0], [0], [1], [0, 0, 1, 1], [], []>} : vector<16x8xf32>, vector<8x512xf32>, vector<16x512xf32> -> vector<16x512xf32>
    %104 = vector.extract_strided_slice %103 {offsets = [0, 0], sizes = [8, 512], strides = [1, 1]} : vector<16x512xf32> to vector<8x512xf32>
    %cst_19 = arith.constant dense<0.000000e+00> : vector<8xf32>
    %105 = vector.multi_reduction <add>, %104, %cst_19 [1] : vector<8x512xf32> to vector<8xf32>
    %106 = vector.shape_cast %105 : vector<8xf32> to vector<8x1xf32>
    %cst_20 = arith.constant 0.001953125 : f32
    %107 = vector.broadcast %cst_20 : f32 to vector<8x1xf32>
    %108 = arith.mulf %106, %107 : vector<8x1xf32>
    %109 = arith.mulf %104, %104 : vector<8x512xf32>
    %cst_21 = arith.constant dense<0.000000e+00> : vector<8xf32>
    %110 = vector.multi_reduction <add>, %109, %cst_21 [1] : vector<8x512xf32> to vector<8xf32>
    %111 = vector.shape_cast %110 : vector<8xf32> to vector<8x1xf32>
    %cst_22 = arith.constant 0.001953125 : f32
    %112 = vector.broadcast %cst_22 : f32 to vector<8x1xf32>
    %113 = arith.mulf %111, %112 : vector<8x1xf32>
    %114 = arith.mulf %108, %108 : vector<8x1xf32>
    %115 = arith.subf %113, %114 : vector<8x1xf32>
    %cst_23 = arith.constant 9.99999974E-6 : f32
    %116 = vector.broadcast %cst_23 : f32 to vector<8x1xf32>
    %117 = arith.addf %115, %116 : vector<8x1xf32>
    %118 = math.rsqrt %117 : vector<8x1xf32>
    %119 = arith.mulf %118, %22 : vector<8x1xf32>
    %120 = vector.broadcast %119 : vector<8x1xf32> to vector<8x512xf32>
    %121 = arith.mulf %104, %120 : vector<8x512xf32>
    %122 = arith.mulf %108, %119 : vector<8x1xf32>
    %123 = arith.subf %23, %122 : vector<8x1xf32>
    %124 = vector.broadcast %123 : vector<8x1xf32> to vector<8x512xf32>
    %125 = arith.addf %121, %124 : vector<8x512xf32>
    %126 = vector.extract_strided_slice %103 {offsets = [8, 0], sizes = [8, 512], strides = [1, 1]} : vector<16x512xf32> to vector<8x512xf32>
    %cst_24 = arith.constant dense<0.000000e+00> : vector<8xf32>
    %127 = vector.multi_reduction <add>, %126, %cst_24 [1] : vector<8x512xf32> to vector<8xf32>
    %128 = vector.shape_cast %127 : vector<8xf32> to vector<8x1xf32>
    %cst_25 = arith.constant 0.001953125 : f32
    %129 = vector.broadcast %cst_25 : f32 to vector<8x1xf32>
    %130 = arith.mulf %128, %129 : vector<8x1xf32>
    %131 = arith.mulf %126, %126 : vector<8x512xf32>
    %cst_26 = arith.constant dense<0.000000e+00> : vector<8xf32>
    %132 = vector.multi_reduction <add>, %131, %cst_26 [1] : vector<8x512xf32> to vector<8xf32>
    %133 = vector.shape_cast %132 : vector<8xf32> to vector<8x1xf32>
    %cst_27 = arith.constant 0.001953125 : f32
    %134 = vector.broadcast %cst_27 : f32 to vector<8x1xf32>
    %135 = arith.mulf %133, %134 : vector<8x1xf32>
    %136 = arith.mulf %130, %130 : vector<8x1xf32>
    %137 = arith.subf %135, %136 : vector<8x1xf32>
    %cst_28 = arith.constant 9.99999974E-6 : f32
    %138 = vector.broadcast %cst_28 : f32 to vector<8x1xf32>
    %139 = arith.addf %137, %138 : vector<8x1xf32>
    %140 = math.rsqrt %139 : vector<8x1xf32>
    %141 = arith.mulf %140, %26 : vector<8x1xf32>
    %142 = vector.broadcast %141 : vector<8x1xf32> to vector<8x512xf32>
    %143 = arith.mulf %126, %142 : vector<8x512xf32>
    %144 = arith.mulf %130, %141 : vector<8x1xf32>
    %145 = arith.subf %27, %144 : vector<8x1xf32>
    %146 = vector.broadcast %145 : vector<8x1xf32> to vector<8x512xf32>
    %147 = arith.addf %143, %146 : vector<8x512xf32>
    %cst_29 = arith.constant 0.000000e+00 : f32
    %148 = vector.broadcast %cst_29 : f32 to vector<8x512xf32>
    %149 = arith.maximumf %125, %148 : vector<8x512xf32>
    %c1_i32_30 = arith.constant 1 : i32
    %150 = tpu.dynamic_rotate %149 by %c1_i32_30 dim 1 : vector<8x512xf32>, i32 -> vector<8x512xf32>
    %c511_i32_31 = arith.constant 511 : i32
    %151 = tpu.dynamic_rotate %149 by %c511_i32_31 dim 1 : vector<8x512xf32>, i32 -> vector<8x512xf32>
    %152 = vector.shape_cast %8 : vector<1x512xi1> to vector<1x512xi1>
    %153 = vector.broadcast %152 : vector<1x512xi1> to vector<8x512xi1>
    %154 = arith.select %153, %151, %150 : vector<8x512xi1>, vector<8x512xf32>
    %155 = vector.shape_cast %10 : vector<1x512xi1> to vector<1x512xi1>
    %156 = vector.broadcast %155 : vector<1x512xi1> to vector<8x512xi1>
    %157 = arith.select %156, %150, %151 : vector<8x512xi1>, vector<8x512xf32>
    %c16_i32_32 = arith.constant 16 : i32
    %158 = tpu.dynamic_rotate %154 by %c16_i32_32 dim 1 : vector<8x512xf32>, i32 -> vector<8x512xf32>
    %c496_i32_33 = arith.constant 496 : i32
    %159 = tpu.dynamic_rotate %154 by %c496_i32_33 dim 1 : vector<8x512xf32>, i32 -> vector<8x512xf32>
    %160 = vector.shape_cast %12 : vector<1x512xi1> to vector<1x512xi1>
    %161 = vector.broadcast %160 : vector<1x512xi1> to vector<8x512xi1>
    %162 = arith.select %161, %159, %158 : vector<8x512xi1>, vector<8x512xf32>
    %163 = vector.shape_cast %14 : vector<1x512xi1> to vector<1x512xi1>
    %164 = vector.broadcast %163 : vector<1x512xi1> to vector<8x512xi1>
    %165 = arith.select %164, %158, %159 : vector<8x512xi1>, vector<8x512xf32>
    %166 = vector.extract_strided_slice %17 {offsets = [0, 0], sizes = [8, 1], strides = [1, 1]} : vector<8x16xf32> to vector<8x1xf32>
    %167 = vector.broadcast %166 : vector<8x1xf32> to vector<8x512xf32>
    %168 = arith.mulf %167, %162 : vector<8x512xf32>
    %169 = vector.extract_strided_slice %17 {offsets = [0, 3], sizes = [8, 1], strides = [1, 1]} : vector<8x16xf32> to vector<8x1xf32>
    %170 = vector.broadcast %169 : vector<8x1xf32> to vector<8x512xf32>
    %171 = arith.mulf %170, %154 : vector<8x512xf32>
    %172 = arith.addf %168, %171 : vector<8x512xf32>
    %173 = vector.extract_strided_slice %17 {offsets = [0, 6], sizes = [8, 1], strides = [1, 1]} : vector<8x16xf32> to vector<8x1xf32>
    %174 = vector.broadcast %173 : vector<8x1xf32> to vector<8x512xf32>
    %175 = arith.mulf %174, %165 : vector<8x512xf32>
    %176 = arith.addf %172, %175 : vector<8x512xf32>
    %c16_i32_34 = arith.constant 16 : i32
    %177 = tpu.dynamic_rotate %149 by %c16_i32_34 dim 1 : vector<8x512xf32>, i32 -> vector<8x512xf32>
    %c496_i32_35 = arith.constant 496 : i32
    %178 = tpu.dynamic_rotate %149 by %c496_i32_35 dim 1 : vector<8x512xf32>, i32 -> vector<8x512xf32>
    %179 = vector.shape_cast %12 : vector<1x512xi1> to vector<1x512xi1>
    %180 = vector.broadcast %179 : vector<1x512xi1> to vector<8x512xi1>
    %181 = arith.select %180, %178, %177 : vector<8x512xi1>, vector<8x512xf32>
    %182 = vector.shape_cast %14 : vector<1x512xi1> to vector<1x512xi1>
    %183 = vector.broadcast %182 : vector<1x512xi1> to vector<8x512xi1>
    %184 = arith.select %183, %177, %178 : vector<8x512xi1>, vector<8x512xf32>
    %185 = vector.extract_strided_slice %17 {offsets = [0, 1], sizes = [8, 1], strides = [1, 1]} : vector<8x16xf32> to vector<8x1xf32>
    %186 = vector.broadcast %185 : vector<8x1xf32> to vector<8x512xf32>
    %187 = arith.mulf %186, %181 : vector<8x512xf32>
    %188 = arith.addf %176, %187 : vector<8x512xf32>
    %189 = vector.extract_strided_slice %17 {offsets = [0, 4], sizes = [8, 1], strides = [1, 1]} : vector<8x16xf32> to vector<8x1xf32>
    %190 = vector.broadcast %189 : vector<8x1xf32> to vector<8x512xf32>
    %191 = arith.mulf %190, %149 : vector<8x512xf32>
    %192 = arith.addf %188, %191 : vector<8x512xf32>
    %193 = vector.extract_strided_slice %17 {offsets = [0, 7], sizes = [8, 1], strides = [1, 1]} : vector<8x16xf32> to vector<8x1xf32>
    %194 = vector.broadcast %193 : vector<8x1xf32> to vector<8x512xf32>
    %195 = arith.mulf %194, %184 : vector<8x512xf32>
    %196 = arith.addf %192, %195 : vector<8x512xf32>
    %c16_i32_36 = arith.constant 16 : i32
    %197 = tpu.dynamic_rotate %157 by %c16_i32_36 dim 1 : vector<8x512xf32>, i32 -> vector<8x512xf32>
    %c496_i32_37 = arith.constant 496 : i32
    %198 = tpu.dynamic_rotate %157 by %c496_i32_37 dim 1 : vector<8x512xf32>, i32 -> vector<8x512xf32>
    %199 = vector.shape_cast %12 : vector<1x512xi1> to vector<1x512xi1>
    %200 = vector.broadcast %199 : vector<1x512xi1> to vector<8x512xi1>
    %201 = arith.select %200, %198, %197 : vector<8x512xi1>, vector<8x512xf32>
    %202 = vector.shape_cast %14 : vector<1x512xi1> to vector<1x512xi1>
    %203 = vector.broadcast %202 : vector<1x512xi1> to vector<8x512xi1>
    %204 = arith.select %203, %197, %198 : vector<8x512xi1>, vector<8x512xf32>
    %205 = vector.extract_strided_slice %17 {offsets = [0, 2], sizes = [8, 1], strides = [1, 1]} : vector<8x16xf32> to vector<8x1xf32>
    %206 = vector.broadcast %205 : vector<8x1xf32> to vector<8x512xf32>
    %207 = arith.mulf %206, %201 : vector<8x512xf32>
    %208 = arith.addf %196, %207 : vector<8x512xf32>
    %209 = vector.extract_strided_slice %17 {offsets = [0, 5], sizes = [8, 1], strides = [1, 1]} : vector<8x16xf32> to vector<8x1xf32>
    %210 = vector.broadcast %209 : vector<8x1xf32> to vector<8x512xf32>
    %211 = arith.mulf %210, %157 : vector<8x512xf32>
    %212 = arith.addf %208, %211 : vector<8x512xf32>
    %213 = vector.extract_strided_slice %17 {offsets = [0, 8], sizes = [8, 1], strides = [1, 1]} : vector<8x16xf32> to vector<8x1xf32>
    %214 = vector.broadcast %213 : vector<8x1xf32> to vector<8x512xf32>
    %215 = arith.mulf %214, %204 : vector<8x512xf32>
    %216 = arith.addf %212, %215 : vector<8x512xf32>
    %cst_38 = arith.constant dense<0.000000e+00> : vector<8x512xf32>
    %217 = tpu.matmul %20, %216, %cst_38 {dimension_numbers = #tpu.dot_dimension_numbers<[1], [0], [0], [1], [0, 0, 1, 1], [], []>} : vector<8x8xf32>, vector<8x512xf32>, vector<8x512xf32> -> vector<8x512xf32>
    %cst_39 = arith.constant dense<0.000000e+00> : vector<8xf32>
    %218 = vector.multi_reduction <add>, %217, %cst_39 [1] : vector<8x512xf32> to vector<8xf32>
    %219 = vector.shape_cast %218 : vector<8xf32> to vector<8x1xf32>
    %cst_40 = arith.constant 0.001953125 : f32
    %220 = vector.broadcast %cst_40 : f32 to vector<8x1xf32>
    %221 = arith.mulf %219, %220 : vector<8x1xf32>
    %222 = arith.mulf %217, %217 : vector<8x512xf32>
    %cst_41 = arith.constant dense<0.000000e+00> : vector<8xf32>
    %223 = vector.multi_reduction <add>, %222, %cst_41 [1] : vector<8x512xf32> to vector<8xf32>
    %224 = vector.shape_cast %223 : vector<8xf32> to vector<8x1xf32>
    %cst_42 = arith.constant 0.001953125 : f32
    %225 = vector.broadcast %cst_42 : f32 to vector<8x1xf32>
    %226 = arith.mulf %224, %225 : vector<8x1xf32>
    %227 = arith.mulf %221, %221 : vector<8x1xf32>
    %228 = arith.subf %226, %227 : vector<8x1xf32>
    %cst_43 = arith.constant 9.99999974E-6 : f32
    %229 = vector.broadcast %cst_43 : f32 to vector<8x1xf32>
    %230 = arith.addf %228, %229 : vector<8x1xf32>
    %231 = math.rsqrt %230 : vector<8x1xf32>
    %232 = arith.mulf %231, %24 : vector<8x1xf32>
    %233 = vector.broadcast %232 : vector<8x1xf32> to vector<8x512xf32>
    %234 = arith.mulf %217, %233 : vector<8x512xf32>
    %235 = arith.mulf %221, %232 : vector<8x1xf32>
    %236 = arith.subf %25, %235 : vector<8x1xf32>
    %237 = vector.broadcast %236 : vector<8x1xf32> to vector<8x512xf32>
    %238 = arith.addf %234, %237 : vector<8x512xf32>
    %239 = arith.addf %238, %147 : vector<8x512xf32>
    %240 = vector.extract_strided_slice %239 {offsets = [0, 0], sizes = [8, 256], strides = [1, 1]} : vector<8x512xf32> to vector<8x256xf32>
    %c0_44 = arith.constant 0 : index
    %c0_45 = arith.constant 0 : index
    %c0_46 = arith.constant 0 : index
    %241 = vector.load %arg4[%c0_44, %c0_45, %c0_46] : memref<2x8x256xf32, #tpu.memory_space<vmem>>, vector<1x8x256xf32>
    %242 = vector.shape_cast %241 : vector<1x8x256xf32> to vector<8x256xf32>
    %243 = vector.shape_cast %240 : vector<8x256xf32> to vector<1x8x256xf32>
    tpu.vector_store %arg4[%c0_44, %c0_45, %c0_46], %243 {strides = array<i32>} : memref<2x8x256xf32, #tpu.memory_space<vmem>>, vector<1x8x256xf32>,
    %244 = vector.extract_strided_slice %239 {offsets = [0, 256], sizes = [8, 256], strides = [1, 1]} : vector<8x512xf32> to vector<8x256xf32>
    %c1_47 = arith.constant 1 : index
    %c0_48 = arith.constant 0 : index
    %c0_49 = arith.constant 0 : index
    %245 = vector.load %arg4[%c1_47, %c0_48, %c0_49] : memref<2x8x256xf32, #tpu.memory_space<vmem>>, vector<1x8x256xf32>
    %246 = vector.shape_cast %245 : vector<1x8x256xf32> to vector<8x256xf32>
    %247 = vector.shape_cast %244 : vector<8x256xf32> to vector<1x8x256xf32>
    tpu.vector_store %arg4[%c1_47, %c0_48, %c0_49], %247 {strides = array<i32>} : memref<2x8x256xf32, #tpu.memory_space<vmem>>, vector<1x8x256xf32>,
    return
  }
}

</mosaic_0001>

<bundles_post_ra>
// kernel: block_forward.1
= control target key start
LH: loop header
LB: loop body
LE: loop exit
PB: predicated region body
PF: predicated region fallthrough
CT: control target
= control target key end

     0   :  { %v1956_v2 = vmov 3   ;;  %v1955_v3 = vmov 0   ;;  %vm80_vm0 = vcmask 1043456   ;;  %s1106_s19 = smov 127   ;;  %v1954_v19 = vmov 1   ;;  %s1109_s22 = smov 16   ;;  %s1938_s0 = inlined_call_operand.vmem [shape: f32[2,4,256], index: 0, kind: input, shape index: {}]   ;;  %s1939_s1 = inlined_call_operand.vmem [shape: f32[16,16], index: 1, kind: input, shape index: {}]   ;;  %s1940_s2 = inlined_call_operand.vmem [shape: f32[16,16], index: 2, kind: input, shape index: {}]   ;;  %s1941_s3 = inlined_call_operand.vmem [shape: f32[8,8], index: 3, kind: input, shape index: {}]   ;;  %s1942_s4 = inlined_call_operand.vmem [shape: f32[2,8,256], index: 4, kind: output, shape index: {}]  }
   0x1   :  { %v1046_v0 = vld [vmem:[%s1938_s0 + $0x8] sm:$0xff]  ;;  %v55_v1 = vld [vmem:[%s1938_s0] sm:$0xff]  ;;  %1071 = vset.pattern.permute.xlu1 %v1956_v2  ;;  %1070 = vset.pattern.permute.xlu0 %v1955_v3  ;;  %s1105_s0 = smov 1   ;;  %v1951_v20 = vmov 6   ;;  %v1945_v21 = vmov 4   ;;  %v1952_v22 = vmov 2   ;;  %v17_v26 = vlaneseq }
   0x2   :  { %v66_v4 = vmax.f32 %v1046_v0, 0.0  ;;  %v64_v5 = vmax.f32 %v55_v1, 0.0  ;;  %v62_v6 = vcombine.high %v1046_v0, %v1046_v0  ;;  %v59_v7 = vcombine.high %v55_v1, %v55_v1  ;;  %v1182_v18 = vld [vmem:[%s1939_s1] sm:$0xff]  ;;  %s1112_s23 = smov 112   ;;  %v53_v61 = vld [vmem:[%s1940_s2 + $0x8] sm:$0xff]  ;;  %s1117_s30 = smov 120  }
   0x3   :  { %v1943_v23 = vmov 7   ;;  %v1947_v24 = vmov 5   ;;  %v1944_v25 = vmov 8   ;;  %v1216_v29 = vand.u32 127, %v17_v26 }
   0x4   :  { %v74_v8 = vrot.slane %v66_v4, 4  ;;  %v72_v9 = vrot.slane %v64_v5, 4  ;;  %v67_v10 = vmax.f32 %v62_v6, 0.0  ;;  %v65_v11 = vmax.f32 %v59_v7, 0.0 }
   0x5   :  { %v22_v30 = vand.u32 15, %v1216_v29  ;;  %v1220_v31 = vadd.s32 128, %v1216_v29  ;;  %vm1950_vm1 = vcmp.lt.s32.totalorder %v1216_v29, 1  ;;  %vm1949_vm2 = vcmp.lt.s32.totalorder %v1216_v29, 127 }
   0x6   :  { %v1152_v12 = vsel %vm80_vm0, %v66_v4, %v74_v8  ;;  %v1155_v13 = vsel %vm80_vm0, %v64_v5, %v72_v9  ;;  %v75_v14 = vrot.slane %v67_v10, 4  ;;  %v73_v16 = vrot.slane %v65_v11, 4 }
   0x7   :  { %89 = vrot.lane.b32.xlu1 %v1152_v12, %s1105_s0  ;;  %85 = vrot.lane.b32.xlu0 %v1155_v13, %s1105_s0  ;;  %vm1224_vm3 = vcmp.eq.s32.totalorder %v22_v30, 0  ;;  %v23_v35 = vand.u32 15, %v1220_v31  ;;  %v1230_v36 = vadd.s32 384, %v1216_v29  ;;  %v1233_v37 = vadd.s32 256, %v1216_v29 }
   0x8   :  { %v1162_v15 = vsel %vm80_vm0, %v67_v10, %v75_v14  ;;  %v1169_v17 = vsel %vm80_vm0, %v65_v11, %v73_v16  ;;  %vm1311_vm9 = vcmp.eq.s32.totalorder %v22_v30, 15  ;;  %v1116_v5 = vmov 0.0  }
   0x9   :  { %vm1245_vm4 = vcmp.eq.s32.totalorder %v23_v35, 0  ;;  %v25_v44 = vand.u32 15, %v1230_v36  ;;  %v24_v45 = vand.u32 15, %v1233_v37  ;;  %vm1295_vm7 = vcmp.eq.s32.totalorder %v23_v35, 15  ;;  %425 = vmatprep.mubr.f32.mxu0 %v1116_v5  ;;  %502 = vmatprep.mubr.f32.mxu1 %v1116_v5 }
   0xa   :  { %vm143_vm11 = vcmp.lt.s32.totalorder %v1216_v29, 16  ;;  %vm156_vm12 = vcmp.lt.s32.totalorder %v1216_v29, 112 }
   0xb   :  { %91 = vrot.lane.b32.xlu1 %v1162_v15, %s1105_s0  ;;  %98 = vrot.lane.b32.xlu0 %v1155_v13, %s1106_s19  ;;  %vm1267_vm5 = vcmp.eq.s32.totalorder %v25_v44, 0  ;;  %vm1271_vm6 = vcmp.eq.s32.totalorder %v24_v45, 0  ;;  %vm1307_vm8 = vcmp.eq.s32.totalorder %v25_v44, 15  ;;  %vm1330_vm10 = vcmp.eq.s32.totalorder %v24_v45, 15 }
   0xc   :  { %v26_v45 = vshra.s32 %v1216_v29, 4 }
   0xf   :  { %100 = vrot.lane.b32.xlu1 %v1169_v17, %s1106_s19  ;;  %87 = vrot.lane.b32.xlu0 %v1169_v17, %s1105_s0 }
  0x13   :  { %104 = vrot.lane.b32.xlu1 %v1162_v15, %s1106_s19  ;;  %102 = vrot.lane.b32.xlu0 %v1152_v12, %s1106_s19 }
  0x17   :  { %195 = vperm.xlu1 %1071, %v1182_v18   ;;  %187 = vperm.xlu0 %1070, %v1182_v18  }
  0x1b   :  { %1073 = vset.pattern.permute.xlu0 %v1954_v19  ;;  %1072 = vset.pattern.permute.xlu1 %v1951_v20 }
  0x1c   :  { %251 = vperm.xlu0 %1073, %v1182_v18   ;;  %207 = vperm.xlu1 %1072, %v1182_v18  }
  0x20   :  { %220 = vrot.lane.b32.xlu0 %v1169_v17, %s1109_s22  ;;  %1074 = vset.pattern.permute.xlu1 %v1945_v21 }
  0x21   :  { %1076 = vset.pattern.permute.xlu0 %v1952_v22  ;;  %263 = vperm.xlu1 %1074, %v1182_v18  }
  0x24   :  { %234 = vrot.lane.b32.xlu0 %v1152_v12, %s1112_s23 }
  0x25   :  { %218 = vrot.lane.b32.xlu1 %v1155_v13, %s1109_s22 }
  0x26   :  { %1075 = vset.pattern.permute.xlu1 %v1943_v23 }
  0x28   :  { %230 = vrot.lane.b32.xlu0 %v1155_v13, %s1112_s23 }
  0x29   :  { %232 = vrot.lane.b32.xlu1 %v1169_v17, %s1112_s23 }
  0x2c   :  { %319 = vperm.xlu0 %1076, %v1182_v18  }
  0x2d   :  { %224 = vrot.lane.b32.xlu1 %v1162_v15, %s1109_s22 }
  0x30   :  { %1077 = vset.pattern.permute.xlu0 %v1947_v24 }
  0x31   :  { %331 = vperm.xlu0 %1077, %v1182_v18   ;;  %275 = vperm.xlu1 %1075, %v1182_v18  }
  0x35   :  { %222 = vrot.lane.b32.xlu1 %v1152_v12, %s1109_s22  ;;  %1078 = vset.pattern.permute.xlu0 %v1944_v25 }
  0x36   :  { %1079 = vset.pattern.permute.xlu1 %v1955_v3 }
  0x39   :  { %236 = vrot.lane.b32.xlu1 %v1162_v15, %s1112_s23 }
  0x79   :  { %v90_v27 = vpop.permute.xlu1 %89  ;;  %v86_v28 = vpop.permute.xlu0 %85 }
  0x7d   :  { %v92_v32 = vpop.permute.xlu1 %91  ;;  %v99_v33 = vpop.permute.xlu0 %98 }
  0x7e   :  { %v97_v40 = vsel %vm1950_vm1, %v92_v32, %v86_v28  ;;  %v94_v55 = vsel %vm1950_vm1, %v90_v27, %v92_v32 }
  0x81   :  { %v101_v38 = vpop.permute.xlu1 %100  ;;  %v88_v39 = vpop.permute.xlu0 %87 }
  0x82   :  { %v109_v41 = vsel %vm1949_vm2, %v99_v33, %v101_v38  ;;  %v96_v48 = vsel %vm1950_vm1, %v86_v28, %v88_v39  ;;  %v95_v56 = vsel %vm1950_vm1, %v88_v39, %v90_v27  ;;  %v27_v39 = vshra.s32 %v1220_v31, 4 }
  0x83   :  { %v1241_v42 = vsel %vm1224_vm3, %v109_v41, %v97_v40  ;;  %v1321_v0 = vsel %vm1311_vm9, %v97_v40, %v109_v41 }
  0x84   :  { %135 = vrot.lane.b32.xlu0 %v1241_v42, %s1109_s22  ;;  %v1378_v44 = vand.u32 15, %v27_v39 }
  0x85   :  { %v105_v46 = vpop.permute.xlu1 %104  ;;  %v103_v47 = vpop.permute.xlu0 %102 }
  0x86   :  { %v108_v49 = vsel %vm1949_vm2, %v101_v38, %v103_v47  ;;  %v110_v51 = vsel %vm1949_vm2, %v105_v46, %v99_v33  ;;  %v107_v52 = vsel %vm1949_vm2, %v103_v47, %v105_v46  ;;  %v29_v46 = vshra.s32 %v1230_v36, 4 }
  0x87   :  { %v1257_v50 = vsel %vm1245_vm4, %v108_v49, %v96_v48  ;;  %v1281_v57 = vsel %vm1267_vm5, %v110_v51, %v94_v55  ;;  %v1285_v58 = vsel %vm1271_vm6, %v107_v52, %v95_v56  ;;  %v1301_v60 = vsel %vm1295_vm7, %v96_v48, %v108_v49 }
  0x88   :  { %150 = vrot.lane.b32.xlu0 %v1257_v50, %s1112_s23  ;;  %137 = vrot.lane.b32.xlu1 %v1257_v50, %s1109_s22  ;;  %v1317_v63 = vsel %vm1307_vm8, %v94_v55, %v110_v51  ;;  %v1336_v4 = vsel %vm1330_vm10, %v95_v56, %v107_v52  ;;  %v28_v47 = vshra.s32 %v1233_v37, 4  ;;  %vm1958_vm13 = vcmp.eq.s32.totalorder %v1378_v44, 0 }
  0x89   :  { %v1386_v49 = vand.u32 15, %v26_v45  ;;  %vm47_vm14 = vcmp.eq.s32.totalorder %v1378_v44, 15  ;;  %v1396_v36 = vand.u32 15, %v29_v46 }
  0x8a   :  { %v1398_v37 = vand.u32 15, %v28_v47 }
  0x8b   :  { %vm1961_vm15 = vcmp.eq.s32.totalorder %v1386_v49, 0  ;;  %vm1963_vm0 = vcmp.eq.s32.totalorder %v1396_v36, 0  ;;  %vm1959_vm1 = vcmp.eq.s32.totalorder %v1386_v49, 15 }
  0x8c   :  { %141 = vrot.lane.b32.xlu0 %v1281_v57, %s1109_s22  ;;  %152 = vrot.lane.b32.xlu1 %v1285_v58, %s1112_s23  ;;  %vm1964_vm2 = vcmp.eq.s32.totalorder %v1398_v37, 0 }
  0x90   :  { %154 = vrot.lane.b32.xlu0 %v1281_v57, %s1112_s23  ;;  %148 = vrot.lane.b32.xlu1 %v1241_v42, %s1112_s23 }
  0x92   :  { %v1349_v6 = vpop.permute.xlu1 %195  ;;  %v1353_v8 = vpop.permute.xlu0 %187 }
  0x93   :  { %v199_v45 = vmul.f32 %v1349_v6, %v1257_v50 }
  0x94   :  { %300 = vrot.lane.b32.xlu0 %v1301_v60, %s1112_s23  ;;  %139 = vrot.lane.b32.xlu1 %v1285_v58, %s1109_s22 }
  0x97   :  { %v1351_v7 = vpop.permute.xlu1 %207  ;;  %v1357_v10 = vpop.permute.xlu0 %251 }
  0x98   :  { %292 = vrot.lane.b32.xlu0 %v1317_v63, %s1109_s22  ;;  %286 = vrot.lane.b32.xlu1 %v1321_v0, %s1109_s22 }
  0x9b   :  { %v1359_v14 = vpop.permute.xlu0 %220 }
  0x9c   :  { %343 = vperm.xlu0 %1078, %v1182_v18   ;;  %288 = vrot.lane.b32.xlu1 %v1301_v60, %s1109_s22  ;;  %v1355_v9 = vpop.permute.xlu1 %263 }
  0x9f   :  { %v1361_v18 = vpop.permute.xlu0 %234 }
  0xa0   :  { %302 = vrot.lane.b32.xlu1 %v1336_v4, %s1112_s23  ;;  %1080 = vset.pattern.permute.xlu0 %v1954_v19  ;;  %v219_v11 = vpop.permute.xlu1 %218 }
  0xa1   :  { %v228_v47 = vsel %vm143_vm11, %v219_v11, %v1359_v14 }
  0xa3   :  { %v1365_v27 = vpop.permute.xlu0 %230 }
  0xa4   :  { %298 = vrot.lane.b32.xlu1 %v1321_v0, %s1112_s23  ;;  %v233_v16 = vpop.permute.xlu1 %232 }
  0xa5   :  { %v239_v50 = vsel %vm156_vm12, %v233_v16, %v1361_v18 }
  0xa7   :  { %v1369_v30 = vpop.permute.xlu0 %319 }
  0xa8   :  { %290 = vrot.lane.b32.xlu1 %v1336_v4, %s1109_s22  ;;  %v1363_v26 = vpop.permute.xlu1 %224 }
  0xac   :  { %304 = vrot.lane.b32.xlu1 %v1317_v63, %s1112_s23  ;;  %v1367_v28 = vpop.permute.xlu1 %275  ;;  %v1373_v33 = vpop.permute.xlu0 %331 }
  0xb0   :  { %v1371_v32 = vpop.permute.xlu1 %222 }
  0xb4   :  { %v1375_v35 = vpop.permute.xlu1 %236 }
  0xf6   :  { %v136_v38 = vpop.permute.xlu0 %135 }
  0xfa   :  { %v138_v40 = vpop.permute.xlu1 %137  ;;  %v151_v41 = vpop.permute.xlu0 %150 }
  0xfb   :  { %v146_v31 = vsel %vm143_vm11, %v136_v38, %v138_v40 }
  0xfe   :  { %v153_v48 = vpop.permute.xlu1 %152  ;;  %v142_v52 = vpop.permute.xlu0 %141 }
  0xff   :  { %v158_v51 = vsel %vm156_vm12, %v151_v41, %v153_v48  ;;  %v147_v23 = vsel %vm143_vm11, %v142_v52, %v136_v38 }
 0x100   :  { %v170_v55 = vsel %vm1958_vm13, %v158_v51, %v146_v31 }
 0x101   :  { %v191_v56 = vmul.f32 %v1353_v8, %v170_v55  ;;  %v182_v55 = vsel %vm47_vm14, %v146_v31, %v158_v51  ;;  %v240_v51 = vsel %vm156_vm12, %v1365_v27, %v233_v16 }
 0x102   :  { %v149_v39 = vpop.permute.xlu1 %148  ;;  %v155_v24 = vpop.permute.xlu0 %154  ;;  %v211_v20 = vmul.f32 %v1351_v7, %v182_v55 }
 0x103   :  { %v159_v25 = vsel %vm156_vm12, %v149_v39, %v151_v41  ;;  %v203_v21 = vadd.f32 %v199_v45, %v191_v56  ;;  %v198_v41 = vmul.f32 %v1349_v6, %v1241_v42  ;;  %v229_v42 = vsel %vm143_vm11, %v1363_v26, %v219_v11 }
 0x104   :  { %v169_v46 = vsel %vm1961_vm15, %v159_v25, %v147_v23  ;;  %v181_v22 = vsel %vm1959_vm1, %v147_v23, %v159_v25  ;;  %v157_v16 = vsel %vm156_vm12, %v153_v48, %v155_v24  ;;  %vm1960_vm1 = vcmp.eq.s32.totalorder %v1398_v37, 15 }
 0x105   :  { %v190_v38 = vmul.f32 %v1353_v8, %v169_v46  ;;  %v243_v46 = vsel %vm1958_vm13, %v239_v50, %v228_v47  ;;  %v215_v55 = vadd.f32 %v211_v20, %v203_v21  ;;  %v210_v2 = vmul.f32 %v1351_v7, %v181_v22 }
 0x106   :  { %v140_v31 = vpop.permute.xlu1 %139  ;;  %v255_v11 = vmul.f32 %v1357_v10, %v243_v46  ;;  %vm1962_vm13 = vcmp.eq.s32.totalorder %v1396_v36, 15  ;;  %v242_v20 = vsel %vm1961_vm15, %v240_v51, %v229_v42  ;;  %v301_v48 = vpop.permute.xlu0 %300  ;;  %v201_v22 = vmul.f32 %v1349_v6, %v1281_v57 }
 0x107   :  { %v144_v56 = vsel %vm143_vm11, %v140_v31, %v142_v52  ;;  %v145_v45 = vsel %vm143_vm11, %v138_v40, %v140_v31  ;;  %v202_v19 = vadd.f32 %v198_v41, %v190_v38  ;;  %v160_v52 = vsel %vm156_vm12, %v155_v24, %v149_v39 }
 0x108   :  { %v171_v40 = vsel %vm1964_vm2, %v157_v16, %v145_v45  ;;  %v172_v31 = vsel %vm1963_vm0, %v160_v52, %v144_v56  ;;  %v259_v23 = vadd.f32 %v255_v11, %v215_v55  ;;  %v200_v39 = vmul.f32 %v1349_v6, %v1285_v58 }
 0x109   :  { %v192_v21 = vmul.f32 %v1353_v8, %v171_v40  ;;  %v214_v24 = vadd.f32 %v210_v2, %v202_v19  ;;  %v193_v25 = vmul.f32 %v1353_v8, %v172_v31  ;;  %v267_v38 = vmul.f32 %v1355_v9, %v1169_v17 }
 0x10a   :  { %v287_v3 = vpop.permute.xlu1 %286  ;;  %v247_v41 = vsel %vm47_vm14, %v228_v47, %v239_v50  ;;  %v254_v55 = vmul.f32 %v1357_v10, %v242_v20  ;;  %v227_v2 = vsel %vm143_vm11, %v1359_v14, %v1371_v32  ;;  %v238_v19 = vsel %vm156_vm12, %v1361_v18, %v1375_v35 }
 0x10b   :  { %v183_v17 = vsel %vm1960_vm1, %v145_v45, %v157_v16  ;;  %v226_v57 = vsel %vm143_vm11, %v1371_v32, %v1363_v26  ;;  %v241_v58 = vsel %vm156_vm12, %v1375_v35, %v1365_v27  ;;  %v184_v6 = vsel %vm1962_vm13, %v144_v56, %v160_v52 }
 0x10c   :  { %v204_v8 = vadd.f32 %v200_v39, %v192_v21  ;;  %v266_v14 = vmul.f32 %v1355_v9, %v1155_v13  ;;  %v258_v18 = vadd.f32 %v254_v55, %v214_v24  ;;  %v205_v47 = vadd.f32 %v201_v22, %v193_v25  ;;  %v293_v13 = vpop.permute.xlu0 %292 }
 0x10d   :  { %v271_v50 = vadd.f32 %v267_v38, %v259_v23  ;;  %vm1981_vm1 = vcmp.eq.s32.totalorder %v1386_v49, 15  ;;  %v279_v26 = vmul.f32 %v1367_v28, %v247_v41  ;;  %v244_v32 = vsel %vm1964_vm2, %v238_v19, %v227_v2 }
 0x10e   :  { %v1462_v46 = vpop.permute.xlu1 %288  ;;  %v246_v45 = vsel %vm1981_vm1, %v229_v42, %v240_v51  ;;  %v212_v27 = vmul.f32 %v1351_v7, %v183_v17  ;;  %v245_v56 = vsel %vm1963_vm0, %v241_v58, %v226_v57  ;;  %v213_v16 = vmul.f32 %v1351_v7, %v184_v6 }
 0x10f   :  { %v296_v52 = vsel %vm143_vm11, %v287_v3, %v1462_v46  ;;  %vm1982_vm1 = vcmp.eq.s32.totalorder %v1378_v44, 0  ;;  %v283_v20 = vadd.f32 %v279_v26, %v271_v50  ;;  %v270_v21 = vadd.f32 %v266_v14, %v258_v18 }
 0x110   :  { %v216_v42 = vadd.f32 %v212_v27, %v204_v8  ;;  %v217_v31 = vadd.f32 %v213_v16, %v205_v47  ;;  %v278_v23 = vmul.f32 %v1367_v28, %v246_v45  ;;  %v256_v7 = vmul.f32 %v1357_v10, %v244_v32 }
 0x111   :  { %v257_v24 = vmul.f32 %v1357_v10, %v245_v56  ;;  %v335_v39 = vmul.f32 %v1373_v33, %v1301_v60  ;;  %v297_v22 = vsel %vm143_vm11, %v293_v13, %v287_v3  ;;  %v268_v3 = vmul.f32 %v1355_v9, %v1152_v12 }
 0x112   :  { %v303_v35 = vpop.permute.xlu1 %302  ;;  %v260_v6 = vadd.f32 %v256_v7, %v216_v42  ;;  %v282_v47 = vadd.f32 %v278_v23, %v270_v21  ;;  %v334_v26 = vmul.f32 %v1373_v33, %v1321_v0  ;;  %v249_v27 = vsel %vm1962_vm13, %v226_v57, %v241_v58 }
 0x113   :  { %v307_v51 = vsel %vm156_vm12, %v301_v48, %v303_v35  ;;  %v261_v14 = vadd.f32 %v257_v24, %v217_v31  ;;  %v281_v42 = vmul.f32 %v1367_v28, %v249_v27  ;;  %v337_v24 = vmul.f32 %v1373_v33, %v1317_v63 }
 0x114   :  { %v311_v40 = vsel %vm1982_vm1, %v307_v51, %v296_v52  ;;  %v315_v55 = vsel %vm47_vm14, %v296_v52, %v307_v51  ;;  %vm1983_vm1 = vcmp.eq.s32.totalorder %v1386_v49, 15 }
 0x115   :  { %v323_v11 = vmul.f32 %v1369_v30, %v311_v40 }
 0x116   :  { %v299_v25 = vpop.permute.xlu1 %298 }
 0x117   :  { %v308_v38 = vsel %vm156_vm12, %v299_v25, %v301_v48  ;;  %v344_v41 = vpop.permute.xlu0 %343  ;;  %v327_v17 = vadd.f32 %v323_v11, %v283_v20  ;;  %v269_v48 = vmul.f32 %v1355_v9, %v1162_v15  ;;  %v272_v15 = vadd.f32 %v268_v3, %v260_v6 }
 0x118   :  { %v310_v8 = vsel %vm1961_vm15, %v308_v38, %v297_v22  ;;  %v347_v10 = vmul.f32 %v344_v41, %v315_v55  ;;  %v314_v50 = vsel %vm1983_vm1, %v297_v22, %v308_v38  ;;  %vm1984_vm15 = vcmp.eq.s32.totalorder %v1398_v37, 15 }
 0x119   :  { %v322_v18 = vmul.f32 %v1369_v30, %v310_v8  ;;  %v339_v60 = vadd.f32 %v335_v39, %v327_v17  ;;  %v248_v32 = vsel %vm1984_vm15, %v227_v2, %v238_v19  ;;  %v346_v52 = vmul.f32 %v344_v41, %v314_v50 }
 0x11a   :  { %v291_v45 = vpop.permute.xlu1 %290  ;;  %v273_v51 = vadd.f32 %v269_v48, %v261_v14  ;;  %v280_v9 = vmul.f32 %v1367_v28, %v248_v32  ;;  %vm354_vm1 = vcmask 64512   ;;  %v1544_v28 = vld [vmem:[%s1940_s2] sm:$0xff] }
 0x11b   :  { %v351_v56 = vadd.f32 %v347_v10, %v339_v60  ;;  %v326_v16 = vadd.f32 %v322_v18, %v282_v47  ;;  %v294_v0 = vsel %vm143_vm11, %v291_v45, %v293_v13  ;;  %v295_v2 = vsel %vm143_vm11, %v1462_v46, %v291_v45 }
 0x11c   :  { %v284_v20 = vadd.f32 %v280_v9, %v272_v15 }
 0x11d   :  { %391 = vmatprep.subr.mxu0 %v351_v56  ;;  %v338_v12 = vadd.f32 %v334_v26, %v326_v16 }
 0x11e   :  { %v305_v40 = vpop.permute.xlu1 %304 }
 0x11f   :  { %v306_v19 = vsel %vm156_vm12, %v303_v35, %v305_v40  ;;  %v309_v57 = vsel %vm156_vm12, %v305_v40, %v299_v25  ;;  %v350_v58 = vadd.f32 %v346_v52, %v338_v12  ;;  %v285_v35 = vadd.f32 %v281_v42, %v273_v51  ;;  %v1569_v51 = vld [vmem:[%s1941_s3] sm:$0xff] }
 0x120   :  { %v312_v13 = vsel %vm1964_vm2, %v306_v19, %v295_v2  ;;  %v313_v31 = vsel %vm1963_vm0, %v309_v57, %v294_v0  ;;  %v316_v21 = vsel %vm1984_vm15, %v295_v2, %v306_v19  ;;  %v317_v23 = vsel %vm1962_vm13, %v294_v0, %v309_v57 }
 0x121   :  { %v324_v46 = vmul.f32 %v1369_v30, %v312_v13  ;;  %v325_v11 = vmul.f32 %v1369_v30, %v313_v31  ;;  %392 = vmatpush1.msra.mxu0 %v350_v58  ;;  %v336_v30 = vmul.f32 %v1373_v33, %v1336_v4  ;;  %v349_v22 = vmul.f32 %v344_v41, %v317_v23 }
 0x122   :  { %1047 = vmatmul.mubr.msk.f32.vlgmr.msra.gmra.mxu0 %vm354_vm1, %v1544_v28  ;;  %v348_v55 = vmul.f32 %v344_v41, %v316_v21  ;;  %v1985_v0 = vmov 3   ;;  %v1986_v19 = vmov 0   ;;  %vm1994_vm15 = vcmp.lt.s32.totalorder %v1216_v29, 1 }
 0x123   :  { %v329_v7 = vadd.f32 %v325_v11, %v285_v35  ;;  %v328_v25 = vadd.f32 %v324_v46, %v284_v20  ;;  %431 = vmatprep.mubr.f32.mxu0 %v1116_v5  ;;  %vm1995_vm13 = vmmov %vm1994_vm15  ;;  %vm1996_vm0 = vcmp.lt.s32.totalorder %v1216_v29, 127 }
 0x124   :  { %vm1997_vm2 = vmmov %vm1996_vm0 }
 0x125   :  { %v341_v39 = vadd.f32 %v337_v24, %v329_v7  ;;  %v340_v38 = vadd.f32 %v336_v30, %v328_v25 }
 0x126   :  { %1048 = vmatmul.mubr.msk.f32.gmra.mxu0 %vm354_vm1, %v53_v61 }
 0x127   :  { %v353_v17 = vadd.f32 %v349_v22, %v341_v39  ;;  %v352_v6 = vadd.f32 %v348_v55, %v340_v38  ;;  %v1599_v39 = vld [vmem:[%s1939_s1 + $0x8] sm:$0xff]  ;;  %v1987_v22 = vmov 1   ;;  %v1988_v38 = vmov 2   ;;  %910 = vmatprep.mubr.f32.mxu0 %v1116_v5 }
 0x128   :  { %v1989_v55 = vmov 6  }
 0x129   :  { %468 = vmatprep.subr.mxu1 %v353_v17  ;;  %v1990_v17 = vmov 5  }
 0x12a   :  { %469 = vmatpush1.msra.mxu1 %v352_v6  ;;  %v1991_v6 = vmov 4  }
 0x12b   :  { %1049 = vmatmul.mubr.msk.f32.vlgmr.msra.gmra.mxu1 %vm354_vm1, %v1544_v28 }
 0x12c   :  { %508 = vmatprep.mubr.f32.mxu1 %v1116_v5 }
 0x12f   :  { %1050 = vmatmul.mubr.msk.f32.gmra.mxu1 %vm354_vm1, %v53_v61 }
 0x130   :  { %981 = vmatprep.mubr.f32.mxu1 %v1116_v5 }
 0x1e2   :  { %v427_v63 = vpop.f32.mrf.mxu0 }
 0x1e3   :  { %v521_v10 = vmul.f32 %v427_v63, %v427_v63 }
 0x1e4   :  { %v429_v8 = vpop.f32.mrf.mxu0 }
 0x1e5   :  { %v522_v14 = vmul.f32 %v429_v8, %v429_v8  ;;  %v515_v4 = vadd.f32 %v429_v8, %v427_v63 }
 0x1e7   :  { %v525_v47 = vadd.f32 %v522_v14, %v521_v10 }
 0x1eb   :  { %v504_v33 = vpop.f32.mrf.mxu1 }
 0x1ec   :  { %v523_v18 = vmul.f32 %v504_v33, %v504_v33  ;;  %v516_v60 = vadd.f32 %v515_v4, %v504_v33 }
 0x1ed   :  { %v506_v3 = vpop.f32.mrf.mxu1 }
 0x1ee   :  { %v517_v41 = vadd.f32 %v516_v60, %v506_v3  ;;  %v524_v48 = vmul.f32 %v506_v3, %v506_v3  ;;  %v526_v50 = vadd.f32 %v525_v47, %v523_v18 }
 0x1f0   :  { %518 = vadd.xlane.f32.xlu0 %v517_v41  ;;  %v527_v45 = vadd.f32 %v526_v50, %v524_v48 }
 0x1f2   :  { %528 = vadd.xlane.f32.xlu1 %v527_v45 }
 0x279   :  { %v519_v26 = vpop.xlane.xlu0 %518 }
 0x27a   :  { %v520_v32 = vmul.f32 0.001953125, %v519_v26 }
 0x27b   :  { %v529_v27 = vpop.xlane.xlu1 %528 }
 0x27c   :  { %v531_v56 = vmul.f32 %v520_v32, %v520_v32  ;;  %v530_v16 = vmul.f32 0.001953125, %v529_v27 }
 0x27e   :  { %v532_v12 = vsub.f32 %v530_v16, %v531_v56 }
 0x280   :  { %v533_v52 = vadd.f32 1e-05, %v532_v12 }
 0x282   :  { %1097 = vrsqrt.f32 %v533_v52 }
 0x28f   :  { %v1098_v15 = vpop.eup %1097 }
 0x290   :  { %v535_v9 = vmul.f32 %v1098_v15, %v1569_v51 }
 0x292   :  { %538 = vperm.xlu1 %1079, %v535_v9   ;;  %v545_v42 = vmul.f32 %v535_v9, %v520_v32 }
 0x294   :  { %547 = vrot.lane.b32.xlu0 %v545_v42, %s1105_s0 }
 0x296   :  { %1082 = vset.pattern.permute.xlu1 %v1985_v0 }
 0x306   :  { %v548_v40 = vpop.permute.xlu0 %547 }
 0x307   :  { %v550_v2 = vsub.f32 %v1569_v51, %v548_v40 }
 0x309   :  { %553 = vperm.xlu0 %1080, %v550_v2  }
 0x30d   :  { %1081 = vset.pattern.permute.xlu0 %v1986_v19  ;;  %v539_v57 = vpop.permute.xlu1 %538 }
 0x30e   :  { %v541_v58 = vmul.f32 %v539_v57, %v427_v63  ;;  %v543_v13 = vmul.f32 %v539_v57, %v504_v33  ;;  %v542_v46 = vmul.f32 %v539_v57, %v429_v8  ;;  %v544_v7 = vmul.f32 %v539_v57, %v506_v3 }
 0x30f   :  { %v1992_v63 = vmov 8   ;;  %v1993_v8 = vmov 7  }
 0x384   :  { %v554_v31 = vpop.permute.xlu0 %553 }
 0x385   :  { %v556_v11 = vadd.f32 %v554_v31, %v541_v58  ;;  %v558_v35 = vadd.f32 %v554_v31, %v543_v13  ;;  %v557_v20 = vadd.f32 %v554_v31, %v542_v46  ;;  %v559_v24 = vadd.f32 %v554_v31, %v544_v7 }
 0x387   :  { %v1576_v21 = vmax.f32 %v556_v11, 0.0  ;;  %v1578_v23 = vmax.f32 %v558_v35, 0.0  ;;  %v1584_v25 = vmax.f32 %v557_v20, 0.0  ;;  %v1590_v30 = vmax.f32 %v559_v24, 0.0 }
 0x389   :  { %613 = vrot.lane.b32.xlu0 %v1578_v23, %s1105_s0  ;;  %609 = vrot.lane.b32.xlu1 %v1576_v21, %s1105_s0 }
 0x38d   :  { %621 = vrot.lane.b32.xlu0 %v1576_v21, %s1106_s19  ;;  %611 = vrot.lane.b32.xlu1 %v1584_v25, %s1105_s0 }
 0x391   :  { %625 = vrot.lane.b32.xlu0 %v1578_v23, %s1106_s19  ;;  %615 = vrot.lane.b32.xlu1 %v1590_v30, %s1105_s0 }
 0x395   :  { %675 = vperm.xlu0 %1081, %v1599_v39   ;;  %623 = vrot.lane.b32.xlu1 %v1584_v25, %s1106_s19 }
 0x399   :  { %1084 = vset.pattern.permute.xlu0 %v1987_v22  ;;  %627 = vrot.lane.b32.xlu1 %v1590_v30, %s1106_s19 }
 0x39a   :  { %739 = vperm.xlu0 %1084, %v1599_v39  }
 0x39d   :  { %683 = vperm.xlu1 %1082, %v1599_v39  }
 0x39e   :  { %1087 = vset.pattern.permute.xlu0 %v1988_v38 }
 0x39f   :  { %807 = vperm.xlu0 %1087, %v1599_v39  }
 0x3a1   :  { %1083 = vset.pattern.permute.xlu1 %v1989_v55 }
 0x3a2   :  { %695 = vperm.xlu1 %1083, %v1599_v39  }
 0x3a3   :  { %1088 = vset.pattern.permute.xlu0 %v1990_v17 }
 0x3a4   :  { %819 = vperm.xlu0 %1088, %v1599_v39  }
 0x3a6   :  { %1085 = vset.pattern.permute.xlu1 %v1991_v6 }
 0x3a7   :  { %751 = vperm.xlu1 %1085, %v1599_v39  }
 0x3a8   :  { %708 = vrot.lane.b32.xlu0 %v1584_v25, %s1109_s22 }
 0x3a9   :  { %1089 = vset.pattern.permute.xlu0 %v1992_v63 }
 0x3ab   :  { %1086 = vset.pattern.permute.xlu1 %v1993_v8 }
 0x3ac   :  { %722 = vrot.lane.b32.xlu0 %v1578_v23, %s1112_s23  ;;  %763 = vperm.xlu1 %1086, %v1599_v39  }
 0x3b0   :  { %718 = vrot.lane.b32.xlu0 %v1576_v21, %s1112_s23  ;;  %706 = vrot.lane.b32.xlu1 %v1576_v21, %s1109_s22 }
 0x3b1   :  { %1090 = vset.pattern.permute.xlu1 %v1991_v6 }
 0x3b4   :  { %720 = vrot.lane.b32.xlu1 %v1584_v25, %s1112_s23 }
 0x3b8   :  { %712 = vrot.lane.b32.xlu1 %v1590_v30, %s1109_s22 }
 0x3bc   :  { %710 = vrot.lane.b32.xlu1 %v1578_v23, %s1109_s22 }
 0x3c0   :  { %724 = vrot.lane.b32.xlu1 %v1590_v30, %s1112_s23 }
 0x3fb   :  { %v614_v10 = vpop.permute.xlu0 %613  ;;  %v610_v14 = vpop.permute.xlu1 %609 }
 0x3ff   :  { %v612_v4 = vpop.permute.xlu1 %611  ;;  %v622_v33 = vpop.permute.xlu0 %621 }
 0x400   :  { %v619_v3 = vsel %vm1994_vm15, %v610_v14, %v612_v4  ;;  %v618_v27 = vsel %vm1995_vm13, %v612_v4, %v614_v10  ;;  %vm2008_vm15 = vcmp.eq.s32.totalorder %v1398_v37, 15 }
 0x403   :  { %v616_v18 = vpop.permute.xlu1 %615  ;;  %v626_v60 = vpop.permute.xlu0 %625 }
 0x404   :  { %v620_v41 = vsel %vm1995_vm13, %v616_v18, %v610_v14 }
 0x407   :  { %v624_v47 = vpop.permute.xlu1 %623 }
 0x408   :  { %v630_v48 = vsel %vm1996_vm0, %v624_v47, %v626_v60  ;;  %v631_v50 = vsel %vm1997_vm2, %v622_v33, %v624_v47  ;;  %vm1998_vm2 = vmmov %vm1996_vm0 }
 0x409   :  { %v1647_v45 = vsel %vm1224_vm3, %v631_v50, %v620_v41  ;;  %v1651_v26 = vsel %vm1245_vm4, %v630_v48, %v619_v3  ;;  %vm1999_vm3 = vmmov %vm1996_vm0  ;;  %v1683_v9 = vsel %vm1295_vm7, %v619_v3, %v630_v48  ;;  %v1687_v53 = vsel %vm1311_vm9, %v620_v41, %v631_v50 }
 0x40a   :  { %641 = vrot.lane.b32.xlu0 %v1647_v45, %s1109_s22  ;;  %643 = vrot.lane.b32.xlu1 %v1651_v26, %s1109_s22  ;;  %vm2000_vm4 = vmmov %vm1995_vm13  ;;  %vm2005_vm9 = vcmp.eq.s32.totalorder %v1398_v37, 0  ;;  %vm2009_vm13 = vcmp.eq.s32.totalorder %v1396_v36, 15 }
 0x40b   :  { %v628_v32 = vpop.permute.xlu1 %627  ;;  %v617_v16 = vsel %vm2000_vm4, %v614_v10, %v616_v18 }
 0x40c   :  { %v629_v56 = vsel %vm1998_vm2, %v626_v60, %v628_v32  ;;  %v632_v43 = vsel %vm1999_vm3, %v628_v32, %v622_v33  ;;  %vm2011_vm3 = vmmov %vm2005_vm9 }
 0x40d   :  { %v635_v34 = vsel %vm1271_vm6, %v629_v56, %v618_v27  ;;  %v636_v12 = vsel %vm1267_vm5, %v632_v43, %v617_v16  ;;  %v1695_v42 = vsel %vm1307_vm8, %v617_v16, %v632_v43  ;;  %v1703_v59 = vsel %vm1330_vm10, %v618_v27, %v629_v56 }
 0x40e   :  { %655 = vrot.lane.b32.xlu0 %v1651_v26, %s1112_s23  ;;  %657 = vrot.lane.b32.xlu1 %v635_v34, %s1112_s23  ;;  %vm2001_vm5 = vcmp.eq.s32.totalorder %v1378_v44, 0  ;;  %vm2002_vm6 = vcmp.eq.s32.totalorder %v1386_v49, 0  ;;  %vm2004_vm8 = vcmp.eq.s32.totalorder %v1386_v49, 15  ;;  %vm2006_vm10 = vcmp.eq.s32.totalorder %v1396_v36, 0  ;;  %v1881_v36 = vpop.f32.mrf.mxu0 }
 0x40f   :  { %vm2003_vm7 = vmmov %vm2001_vm5 }
 0x410   :  { %v676_v1 = vpop.permute.xlu0 %675  ;;  %vm2007_vm0 = vmmov %vm2002_vm6 }
 0x411   :  { %vm2010_vm2 = vmmov %vm2004_vm8 }
 0x412   :  { %647 = vrot.lane.b32.xlu0 %v636_v12, %s1109_s22  ;;  %653 = vrot.lane.b32.xlu1 %v1647_v45, %s1112_s23  ;;  %vm2012_vm4 = vmmov %vm2006_vm10 }
 0x415   :  { %v1727_v2 = vpop.permute.xlu0 %739 }
 0x416   :  { %659 = vrot.lane.b32.xlu0 %v636_v12, %s1112_s23  ;;  %645 = vrot.lane.b32.xlu1 %v635_v34, %s1109_s22 }
 0x418   :  { %v684_v54 = vpop.permute.xlu1 %683 }
 0x419   :  { %v1677_v52 = vmul.f32 %v684_v54, %v635_v34  ;;  %v1679_v15 = vmul.f32 %v684_v54, %v636_v12  ;;  %v687_v14 = vmul.f32 %v684_v54, %v1651_v26  ;;  %v686_v50 = vmul.f32 %v684_v54, %v1647_v45 }
 0x41a   :  { %788 = vrot.lane.b32.xlu0 %v1683_v9, %s1112_s23  ;;  %774 = vrot.lane.b32.xlu1 %v1687_v53, %s1109_s22  ;;  %v1731_v19 = vpop.permute.xlu0 %807 }
 0x41d   :  { %v1723_v62 = vpop.permute.xlu1 %695 }
 0x41e   :  { %780 = vrot.lane.b32.xlu0 %v1695_v42, %s1109_s22  ;;  %776 = vrot.lane.b32.xlu1 %v1683_v9, %s1109_s22 }
 0x41f   :  { %v1733_v57 = vpop.permute.xlu0 %819 }
 0x422   :  { %831 = vperm.xlu0 %1089, %v1599_v39   ;;  %790 = vrot.lane.b32.xlu1 %v1703_v59, %s1112_s23  ;;  %v1725_v40 = vpop.permute.xlu1 %751 }
 0x423   :  { %v709_v13 = vpop.permute.xlu0 %708 }
 0x426   :  { %786 = vrot.lane.b32.xlu1 %v1687_v53, %s1112_s23  ;;  %842 = vrot.lane.b32.xlu0 %v1544_v28, %s1117_s30 }
 0x427   :  { %1091 = vset.pattern.permute.xlu0 %v1988_v38  ;;  %v1729_v28 = vpop.permute.xlu1 %763  ;;  %v723_v46 = vpop.permute.xlu0 %722 }
 0x42a   :  { %778 = vrot.lane.b32.xlu1 %v1703_v59, %s1109_s22 }
 0x42b   :  { %v707_v5 = vpop.permute.xlu1 %706  ;;  %v719_v35 = vpop.permute.xlu0 %718 }
 0x42c   :  { %v716_v3 = vsel %vm143_vm11, %v707_v5, %v709_v13 }
 0x42e   :  { %792 = vrot.lane.b32.xlu1 %v1695_v42, %s1112_s23 }
 0x42f   :  { %v721_v58 = vpop.permute.xlu1 %720 }
 0x430   :  { %v727_v4 = vsel %vm156_vm12, %v721_v58, %v723_v46 }
 0x431   :  { %v731_v26 = vsel %vm2003_vm7, %v727_v4, %v716_v3  ;;  %vm2014_vm7 = vmmov %vm2008_vm15 }
 0x433   :  { %v1735_v31 = vpop.permute.xlu1 %712 }
 0x434   :  { %v717_v45 = vsel %vm143_vm11, %v1735_v31, %v707_v5 }
 0x437   :  { %v1737_v11 = vpop.permute.xlu1 %710 }
 0x43b   :  { %v725_v20 = vpop.permute.xlu1 %724 }
 0x47c   :  { %v642_v7 = vpop.permute.xlu0 %641  ;;  %v644_v24 = vpop.permute.xlu1 %643 }
 0x47d   :  { %v651_v38 = vsel %vm143_vm11, %v642_v7, %v644_v24 }
 0x480   :  { %v656_v39 = vpop.permute.xlu0 %655  ;;  %v658_v22 = vpop.permute.xlu1 %657 }
 0x481   :  { %v662_v55 = vsel %vm156_vm12, %v656_v39, %v658_v22 }
 0x482   :  { %v666_v6 = vsel %vm2001_vm5, %v662_v55, %v651_v38  ;;  %v670_v60 = vsel %vm47_vm14, %v651_v38, %v662_v55 }
 0x483   :  { %v679_v63 = vmul.f32 %v676_v1, %v666_v6  ;;  %v699_v56 = vmul.f32 %v1723_v62, %v670_v60  ;;  %v743_v6 = vmul.f32 %v1727_v2, %v731_v26  ;;  %v754_v60 = vmul.f32 %v1725_v40, %v1576_v21 }
 0x484   :  { %v648_v8 = vpop.permute.xlu0 %647  ;;  %v654_v10 = vpop.permute.xlu1 %653 }
 0x485   :  { %v652_v33 = vsel %vm143_vm11, %v648_v8, %v642_v7  ;;  %v663_v18 = vsel %vm156_vm12, %v654_v10, %v656_v39  ;;  %v691_v41 = vadd.f32 %v687_v14, %v679_v63  ;;  %v728_v39 = vsel %vm156_vm12, %v719_v35, %v721_v58 }
 0x486   :  { %v665_v47 = vsel %vm2002_vm6, %v663_v18, %v652_v33  ;;  %v669_v34 = vsel %vm2004_vm8, %v652_v33, %v663_v18  ;;  %v730_v63 = vsel %vm2007_vm0, %v728_v39, %v717_v45  ;;  %vm2013_vm6 = vmmov %vm2007_vm0 }
 0x487   :  { %v678_v48 = vmul.f32 %v676_v1, %v665_v47  ;;  %v703_v7 = vadd.f32 %v699_v56, %v691_v41  ;;  %v742_v58 = vmul.f32 %v1727_v2, %v730_v63  ;;  %v755_v47 = vmul.f32 %v1725_v40, %v1584_v25  ;;  %vm2015_vm8 = vmmov %vm2009_vm13 }
 0x488   :  { %v660_v32 = vpop.permute.xlu0 %659  ;;  %v646_v27 = vpop.permute.xlu1 %645  ;;  %v735_v41 = vsel %vm47_vm14, %v716_v3, %v727_v4  ;;  %v729_v25 = vsel %vm156_vm12, %v725_v20, %v719_v35 }
 0x489   :  { %v661_v43 = vsel %vm156_vm12, %v658_v22, %v660_v32  ;;  %v664_v16 = vsel %vm156_vm12, %v660_v32, %v654_v10  ;;  %v690_v12 = vadd.f32 %v686_v50, %v678_v48  ;;  %v649_v54 = vsel %vm143_vm11, %v646_v27, %v648_v8 }
 0x48a   :  { %v650_v61 = vsel %vm143_vm11, %v644_v24, %v646_v27  ;;  %v698_v22 = vmul.f32 %v1723_v62, %v669_v34  ;;  %v668_v55 = vsel %vm2006_vm10, %v664_v16, %v649_v54  ;;  %v747_v24 = vadd.f32 %v743_v6, %v703_v7  ;;  %vm2018_vm10 = vmmov %vm2012_vm4 }
 0x48b   :  { %v667_v38 = vsel %vm2005_vm9, %v661_v43, %v650_v61  ;;  %v681_v14 = vmul.f32 %v676_v1, %v668_v55  ;;  %v726_v48 = vsel %vm156_vm12, %v723_v46, %v725_v20  ;;  %v671_v26 = vsel %vm2008_vm15, %v650_v61, %v661_v43  ;;  %vm2016_vm9 = vmmov %vm2010_vm2 }
 0x48c   :  { %v775_v5 = vpop.permute.xlu1 %774  ;;  %v702_v8 = vadd.f32 %v698_v22, %v690_v12  ;;  %v680_v10 = vmul.f32 %v676_v1, %v667_v38  ;;  %v789_v33 = vpop.permute.xlu0 %788  ;;  %v715_v1 = vsel %vm143_vm11, %v709_v13, %v1737_v11  ;;  %v672_v21 = vsel %vm2009_vm13, %v649_v54, %v664_v16 }
 0x48d   :  { %v693_v4 = vadd.f32 %v1679_v15, %v681_v14  ;;  %v759_v3 = vadd.f32 %v755_v47, %v747_v24  ;;  %v767_v46 = vmul.f32 %v1729_v28, %v735_v41  ;;  %v734_v13 = vsel %vm2010_vm2, %v717_v45, %v728_v39 }
 0x48e   :  { %v746_v50 = vadd.f32 %v742_v58, %v702_v8  ;;  %v692_v32 = vadd.f32 %v1677_v52, %v680_v10  ;;  %v714_v27 = vsel %vm143_vm11, %v1737_v11, %v1735_v31  ;;  %v732_v56 = vsel %vm2011_vm3, %v726_v48, %v715_v1 }
 0x48f   :  { %v700_v35 = vmul.f32 %v1723_v62, %v671_v26  ;;  %v701_v52 = vmul.f32 %v1723_v62, %v672_v21  ;;  %v733_v43 = vsel %vm2012_vm4, %v729_v25, %v714_v27  ;;  %v771_v54 = vadd.f32 %v767_v46, %v759_v3 }
 0x490   :  { %v1786_v18 = vpop.permute.xlu1 %776  ;;  %v781_v16 = vpop.permute.xlu0 %780  ;;  %v758_v11 = vadd.f32 %v754_v60, %v746_v50  ;;  %v823_v61 = vmul.f32 %v1733_v57, %v1683_v9  ;;  %v766_v7 = vmul.f32 %v1729_v28, %v734_v13  ;;  %v744_v39 = vmul.f32 %v1727_v2, %v732_v56 }
 0x491   :  { %v784_v15 = vsel %vm143_vm11, %v775_v5, %v1786_v18  ;;  %v704_v45 = vadd.f32 %v700_v35, %v692_v32  ;;  %v705_v12 = vadd.f32 %v701_v52, %v693_v4  ;;  %v745_v38 = vmul.f32 %v1727_v2, %v733_v43 }
 0x492   :  { %v785_v55 = vsel %vm143_vm11, %v781_v16, %v775_v5  ;;  %v770_v8 = vadd.f32 %v766_v7, %v758_v11  ;;  %v822_v60 = vmul.f32 %v1733_v57, %v1687_v53  ;;  %v756_v2 = vmul.f32 %v1725_v40, %v1578_v23 }
 0x493   :  { %v748_v10 = vadd.f32 %v744_v39, %v704_v45  ;;  %v749_v9 = vadd.f32 %v745_v38, %v705_v12  ;;  %v757_v5 = vmul.f32 %v1725_v40, %v1590_v30  ;;  %v737_v41 = vsel %vm2015_vm8, %v714_v27, %v729_v25 }
 0x494   :  { %v791_v34 = vpop.permute.xlu1 %790  ;;  %v825_v43 = vmul.f32 %v1733_v57, %v1695_v42  ;;  %v1885_v42 = vpop.f32.mrf.mxu0 }
 0x495   :  { %v795_v20 = vsel %vm156_vm12, %v789_v33, %v791_v34  ;;  %v760_v3 = vadd.f32 %v756_v2, %v748_v10  ;;  %v761_v30 = vadd.f32 %v757_v5, %v749_v9 }
 0x496   :  { %v799_v31 = vsel %vm2001_vm5, %v795_v20, %v784_v15  ;;  %v803_v50 = vsel %vm47_vm14, %v784_v15, %v795_v20  ;;  %vm2017_vm14 = vmmov %vm2011_vm3 }
 0x497   :  { %v811_v62 = vmul.f32 %v1731_v19, %v799_v31 }
 0x498   :  { %v787_v22 = vpop.permute.xlu1 %786 }
 0x499   :  { %v815_v6 = vadd.f32 %v811_v62, %v771_v54  ;;  %v796_v63 = vsel %vm156_vm12, %v787_v22, %v789_v33  ;;  %v736_v33 = vsel %vm2014_vm7, %v715_v1, %v726_v48  ;;  %v769_v48 = vmul.f32 %v1729_v28, %v737_v41 }
 0x49a   :  { %v798_v24 = vsel %vm2013_vm6, %v796_v63, %v785_v55  ;;  %v802_v26 = vsel %vm2016_vm9, %v785_v55, %v796_v63  ;;  %v768_v40 = vmul.f32 %v1729_v28, %v736_v33  ;;  %v566_v55 = vmul.f32 %v1881_v36, %v1881_v36 }
 0x49b   :  { %v810_v14 = vmul.f32 %v1731_v19, %v798_v24  ;;  %v827_v58 = vadd.f32 %v823_v61, %v815_v6  ;;  %v773_v15 = vadd.f32 %v769_v48, %v761_v30  ;;  %v1883_v61 = vpop.f32.mrf.mxu1  ;;  %v567_v6 = vmul.f32 %v1885_v42, %v1885_v42 }
 0x49c   :  { %v779_v47 = vpop.permute.xlu1 %778  ;;  %v772_v52 = vadd.f32 %v768_v40, %v760_v3  ;;  %v568_v24 = vmul.f32 %v1883_v61, %v1883_v61 }
 0x49d   :  { %v814_v53 = vadd.f32 %v810_v14, %v770_v8  ;;  %v832_v21 = vpop.permute.xlu0 %831  ;;  %v782_v1 = vsel %vm143_vm11, %v779_v47, %v781_v16  ;;  %v783_v49 = vsel %vm143_vm11, %v1786_v18, %v779_v47  ;;  %vm2019_vm11 = vmmov %vm2014_vm7  ;;  %v824_v16 = vmul.f32 %v1733_v57, %v1703_v59  ;;  %v1889_v57 = vpop.f32.mrf.mxu1 }
 0x49e   :  { %v834_v32 = vmul.f32 %v832_v21, %v802_v26  ;;  %v835_v23 = vmul.f32 %v832_v21, %v803_v50  ;;  %v560_v59 = vadd.f32 %v1885_v42, %v1881_v36  ;;  %v570_v9 = vadd.f32 %v567_v6, %v566_v55 }
 0x49f   :  { %v826_v4 = vadd.f32 %v822_v60, %v814_v53  ;;  %v569_v33 = vmul.f32 %v1889_v57, %v1889_v57 }
 0x4a0   :  { %v793_v25 = vpop.permute.xlu1 %792  ;;  %v839_v44 = vadd.f32 %v835_v23, %v827_v58  ;;  %v561_v7 = vadd.f32 %v560_v59, %v1883_v61  ;;  %v571_v26 = vadd.f32 %v570_v9, %v568_v24 }
 0x4a1   :  { %v794_v46 = vsel %vm156_vm12, %v791_v34, %v793_v25  ;;  %v797_v13 = vsel %vm156_vm12, %v793_v25, %v787_v22  ;;  %v838_v27 = vadd.f32 %v834_v32, %v826_v4  ;;  %v843_v56 = vpop.permute.xlu0 %842  ;;  %vm2020_vm12 = vmmov %vm2015_vm8 }
 0x4a2   :  { %v800_v28 = vsel %vm2017_vm14, %v794_v46, %v783_v49  ;;  %v801_v35 = vsel %vm2018_vm10, %v797_v13, %v782_v1  ;;  %876 = vmatprep.subr.mxu0 %v839_v44  ;;  %v804_v29 = vsel %vm2019_vm11, %v783_v49, %v794_v46  ;;  %v805_v34 = vsel %vm2020_vm12, %v782_v1, %v797_v13 }
 0x4a3   :  { %v812_v20 = vmul.f32 %v1731_v19, %v800_v28  ;;  %v813_v18 = vmul.f32 %v1731_v19, %v801_v35  ;;  %877 = vmatpush1.msra.mxu0 %v838_v27  ;;  %v836_v12 = vmul.f32 %v832_v21, %v804_v29  ;;  %v837_v19 = vmul.f32 %v832_v21, %v805_v34 }
 0x4a4   :  { %1051 = vmatmul.mubr.msk.f32.vlgmr.msra.gmra.mxu0 %vm354_vm1, %v843_v56  ;;  %v562_v39 = vadd.f32 %v561_v7, %v1889_v57  ;;  %v572_v21 = vadd.f32 %v571_v26, %v569_v33 }
 0x4a5   :  { %v816_v31 = vadd.f32 %v812_v20, %v772_v52  ;;  %v817_v11 = vadd.f32 %v813_v18, %v773_v15 }
 0x4a6   :  { %563 = vadd.xlane.f32.xlu1 %v562_v39 }
 0x4a7   :  { %v828_v45 = vadd.f32 %v824_v16, %v816_v31  ;;  %v829_v54 = vadd.f32 %v825_v43, %v817_v11 }
 0x4a9   :  { %v840_v62 = vadd.f32 %v836_v12, %v828_v45  ;;  %v841_v37 = vadd.f32 %v837_v19, %v829_v54 }
 0x4ab   :  { %947 = vmatprep.subr.mxu1 %v841_v37 }
 0x4ac   :  { %948 = vmatpush1.msra.mxu1 %v840_v62 }
 0x4ad   :  { %1052 = vmatmul.mubr.msk.f32.vlgmr.msra.gmra.mxu1 %vm354_vm1, %v843_v56 }
 0x52f   :  { %v564_v32 = vpop.xlane.xlu1 %563 }
 0x530   :  { %v565_v4 = vmul.f32 0.001953125, %v564_v32 }
 0x532   :  { %v576_v25 = vmul.f32 %v565_v4, %v565_v4 }
 0x564   :  { %v1893_v22 = vpop.f32.mrf.mxu0 }
 0x565   :  { %v994_v63 = vmul.f32 %v1893_v22, %v1893_v22 }
 0x566   :  { %v1895_v38 = vpop.f32.mrf.mxu0 }
 0x567   :  { %v995_v8 = vmul.f32 %v1895_v38, %v1895_v38  ;;  %v988_v10 = vadd.f32 %v1895_v38, %v1893_v22 }
 0x569   :  { %v998_v58 = vadd.f32 %v995_v8, %v994_v63 }
 0x56d   :  { %v983_v14 = vpop.f32.mrf.mxu1 }
 0x56e   :  { %v996_v60 = vmul.f32 %v983_v14, %v983_v14  ;;  %v989_v2 = vadd.f32 %v988_v10, %v983_v14 }
 0x56f   :  { %v985_v5 = vpop.f32.mrf.mxu1 }
 0x570   :  { %v999_v47 = vadd.f32 %v998_v58, %v996_v60  ;;  %v997_v41 = vmul.f32 %v985_v5, %v985_v5  ;;  %v990_v50 = vadd.f32 %v989_v2, %v985_v5 }
 0x572   :  { %v1000_v53 = vadd.f32 %v999_v47, %v997_v41  ;;  %991 = vadd.xlane.f32.xlu0 %v990_v50 }
 0x574   :  { %1001 = vadd.xlane.f32.xlu1 %v1000_v53 }
 0x576   :  { %573 = vadd.xlane.f32.xlu0 %v572_v21 }
 0x5fb   :  { %v992_v23 = vpop.xlane.xlu0 %991 }
 0x5fc   :  { %v993_v3 = vmul.f32 0.001953125, %v992_v23 }
 0x5fd   :  { %v1002_v30 = vpop.xlane.xlu1 %1001 }
 0x5fe   :  { %v1004_v40 = vmul.f32 %v993_v3, %v993_v3  ;;  %v1003_v48 = vmul.f32 0.001953125, %v1002_v30 }
 0x5ff   :  { %v574_v1 = vpop.xlane.xlu0 %573 }
 0x600   :  { %v1005_v44 = vsub.f32 %v1003_v48, %v1004_v40  ;;  %v575_v49 = vmul.f32 0.001953125, %v574_v1 }
 0x602   :  { %v1006_v46 = vadd.f32 1e-05, %v1005_v44  ;;  %v577_v13 = vsub.f32 %v575_v49, %v576_v25 }
 0x604   :  { %1099 = vrsqrt.f32 %v1006_v46  ;;  %v578_v27 = vadd.f32 1e-05, %v577_v13 }
 0x606   :  { %1101 = vrsqrt.f32 %v578_v27 }
 0x611   :  { %v1100_v56 = vpop.eup %1099 }
 0x612   :  { %v1008_v28 = vmul.f32 %v1100_v56, %v1569_v51 }
 0x613   :  { %v1102_v35 = vpop.eup %1101 }
 0x614   :  { %v1018_v52 = vmul.f32 %v1008_v28, %v993_v3  ;;  %v580_v15 = vmul.f32 %v1102_v35, %v1569_v51 }
 0x616   :  { %1020 = vrot.lane.b32.xlu1 %v1018_v52, %s1105_s0  ;;  %v590_v20 = vmul.f32 %v580_v15, %v565_v4 }
 0x618   :  { %592 = vrot.lane.b32.xlu0 %v590_v20, %s1105_s0 }
 0x61a   :  { %583 = vperm.xlu1 %1090, %v580_v15  }
 0x61c   :  { %1011 = vperm.xlu0 %1091, %v1008_v28  }
 0x61e   :  { %1092 = vset.pattern.permute.xlu1 %v1990_v17 }
 0x620   :  { %1094 = vset.pattern.permute.xlu0 %v1985_v0 }
 0x688   :  { %v1021_v34 = vpop.permute.xlu1 %1020 }
 0x689   :  { %v1023_v43 = vsub.f32 %v1569_v51, %v1021_v34 }
 0x68a   :  { %v593_v18 = vpop.permute.xlu0 %592 }
 0x68b   :  { %v595_v29 = vsub.f32 %v1569_v51, %v593_v18 }
 0x68d   :  { %598 = vperm.xlu1 %1092, %v595_v29  }
 0x691   :  { %1093 = vset.pattern.permute.xlu1 %v1985_v0 }
 0x692   :  { %1026 = vperm.xlu1 %1093, %v1023_v43  }
 0x695   :  { %v584_v16 = vpop.permute.xlu1 %583 }
 0x696   :  { %v586_v45 = vmul.f32 %v584_v16, %v1881_v36  ;;  %v587_v12 = vmul.f32 %v584_v16, %v1885_v42  ;;  %v588_v17 = vmul.f32 %v584_v16, %v1883_v61  ;;  %v589_v19 = vmul.f32 %v584_v16, %v1889_v57 }
 0x697   :  { %v1012_v11 = vpop.permute.xlu0 %1011 }
 0x698   :  { %v1014_v54 = vmul.f32 %v1012_v11, %v1893_v22  ;;  %v1015_v62 = vmul.f32 %v1012_v11, %v1895_v38  ;;  %v1016_v37 = vmul.f32 %v1012_v11, %v983_v14  ;;  %v1017_v51 = vmul.f32 %v1012_v11, %v985_v5 }
 0x708   :  { %v599_v31 = vpop.permute.xlu1 %598 }
 0x709   :  { %v601_v59 = vadd.f32 %v599_v31, %v586_v45  ;;  %v602_v0 = vadd.f32 %v599_v31, %v587_v12  ;;  %v603_v7 = vadd.f32 %v599_v31, %v588_v17  ;;  %v604_v39 = vadd.f32 %v599_v31, %v589_v19 }
 0x70d   :  { %v1027_v55 = vpop.permute.xlu1 %1026 }
 0x70e   :  { %v1029_v6 = vadd.f32 %v1027_v55, %v1014_v54  ;;  %v1030_v63 = vadd.f32 %v1027_v55, %v1015_v62  ;;  %v1031_v36 = vadd.f32 %v1027_v55, %v1016_v37  ;;  %v1032_v8 = vadd.f32 %v1027_v55, %v1017_v51 }
 0x710   :  { %v1033_v42 = vadd.f32 %v1029_v6, %v601_v59  ;;  %v1034_v24 = vadd.f32 %v1030_v63, %v602_v0  ;;  %v1035_v61 = vadd.f32 %v1031_v36, %v603_v7  ;;  %v1036_v10 = vadd.f32 %v1032_v8, %v604_v39 }
 0x712   :  { %1037 = vst [vmem:[%s1942_s4] sm:$0xff] %v1033_v42  ;;  %1038 = vst [vmem:[%s1942_s4 + $0x8] sm:$0xff] %v1034_v24 }
 0x713   :  { %1053 = vst [vmem:[%s1942_s4 + $0x10] sm:$0xff] %v1035_v61  ;;  %1054 = vst [vmem:[%s1942_s4 + $0x18] sm:$0xff] %v1036_v10 }

</bundles_post_ra>
